<compile_context>
chip_gen: v5e
topology: v5e:2x2
jax: 0.10.0
libtpu: 0.0.40
codegen_flags: <defaults>
</compile_context>

<pallas_src>
import numpy as np
import jax
import jax.numpy as jnp
from jax.experimental import pallas as pl
from jax.experimental.pallas import tpu as pltpu


LANE = 128      # TPU lane width: Cout is padded to this for unmasked stores.
SUBLANE = 16    # bf16 sublane packing: keep M tiles a multiple of this.


def _round_up(x, m):
    return (x + m - 1) // m * m


# ----------------------------------------------------------------------------
# Pallas kernel: fused GEMM + bias + ReLU (M-tiled, weight/bias resident)
# ----------------------------------------------------------------------------
def _matmul_bias_relu_kernel(x_ref, w_ref, b_ref, o_ref):
    acc = jnp.dot(x_ref[...], w_ref[...], preferred_element_type=jnp.float32)
    acc = acc + b_ref[...]                       # (1, Npad) broadcast over rows
    o_ref[...] = jnp.maximum(acc, 0.0).astype(o_ref.dtype)


def matmul_bias_relu(x, w, b_row, *, out_dtype=jnp.bfloat16, tile_m=1024):
    """relu(x @ w + b_row).

    x:     (M, K)      bf16 (im2col columns)
    w:     (K, Npad)   bf16, Npad a multiple of 128 (lane-dense, zero-padded)
    b_row: (1, Npad)   f32
    Returns (M, Npad) in `out_dtype`.
    """
    M, K = x.shape
    Kw, n_pad = w.shape
    assert Kw == K and n_pad % LANE == 0

    tm = min(tile_m, _round_up(M, SUBLANE))
    m_pad = _round_up(M, tm)
    if m_pad != M:
        x = jnp.pad(x, ((0, m_pad - M), (0, 0)))
    grid_m = m_pad // tm

    out = pl.pallas_call(
        _matmul_bias_relu_kernel,
        out_shape=jax.ShapeDtypeStruct((m_pad, n_pad), out_dtype),
        grid=(grid_m,),
        in_specs=[
            pl.BlockSpec((tm, K), lambda i: (i, 0)),     # pipelined row tiles
            pl.BlockSpec((K, n_pad), lambda i: (0, 0)),  # weight: resident
            pl.BlockSpec((1, n_pad), lambda i: (0, 0)),  # bias:   resident
        ],
        out_specs=pl.BlockSpec((tm, n_pad), lambda i: (i, 0)),
        compiler_params=pltpu.CompilerParams(
            # v7x has 2 TensorCores per chip: shard the row tiles across them.
            dimension_semantics=("parallel",),
        ),
    )(x, w, b_row)
    return out[:M]


# ----------------------------------------------------------------------------
# Conv2d (stride, no padding) = im2col (XLA glue) + Pallas GEMM+bias+ReLU
# ----------------------------------------------------------------------------
def _im2col(x_nhwc, kh, kw, stride):
    n, h, w, c = x_nhwc.shape
    oh = (h - kh) // stride + 1
    ow = (w - kw) // stride + 1
    patches = []
    for i in range(kh):
        for j in range(kw):
            patches.append(
                jax.lax.slice(
                    x_nhwc,
                    (0, i, j, 0),
                    (n, i + (oh - 1) * stride + 1, j + (ow - 1) * stride + 1, c),
                    (1, stride, stride, 1),
                )
            )
    p = jnp.stack(patches, axis=3)               # (N, OH, OW, KH*KW, C)
    return p.reshape(n * oh * ow, kh * kw * c), oh, ow


def conv2d_relu_nhwc(x_nhwc, w_mat, b_row, kh, kw, stride, cout,
                     *, out_dtype=jnp.bfloat16, tile_m=1024):
    """x_nhwc: (N, H, W, Cin); w_mat: (KH*KW*Cin, 128) bf16, (kh,kw,cin)-major."""
    n = x_nhwc.shape[0]
    cols, oh, ow = _im2col(x_nhwc.astype(jnp.bfloat16), kh, kw, stride)
    y = matmul_bias_relu(cols, w_mat, b_row, out_dtype=out_dtype, tile_m=tile_m)
    return y[:, :cout].reshape(n, oh, ow, cout)


# ----------------------------------------------------------------------------
# DQNBase module (deterministic Kaiming-uniform init, zero bias)
# ----------------------------------------------------------------------------
def _kaiming_uniform_conv(key, cout, cin, kh, kw):
    fan_in = cin * kh * kw
    bound = float(np.sqrt(6.0 / fan_in))         # kaiming_uniform_, a=0
    return jax.random.uniform(key, (cout, cin, kh, kw), jnp.float32, -bound, bound)


def _oihw_to_gemm_padded(w_oihw, n_pad):
    # (Cout, Cin, KH, KW) -> (KH, KW, Cin, Cout) -> (KH*KW*Cin, Cout) -> pad Cout
    cout = w_oihw.shape[0]
    w = jnp.transpose(w_oihw, (2, 3, 1, 0)).reshape(-1, cout)
    w = jnp.pad(w, ((0, 0), (0, n_pad - cout)))
    return w.astype(jnp.bfloat16)


def _pad_bias_row(b, n_pad):
    return jnp.pad(b, (0, n_pad - b.shape[0])).reshape(1, n_pad).astype(jnp.float32)


class DQNBasePallas:
    def __init__(self, num_channels, embedding_dim=7 * 7 * 64, key=None):
        if key is None:
            key = jax.random.PRNGKey(0)
        k1, k2, k3 = jax.random.split(key, 3)
        self.embedding_dim = embedding_dim

        # PyTorch-layout (OIHW, f32) parameters kept for the reference check.
        self.w1 = _kaiming_uniform_conv(k1, 32, num_channels, 8, 8)
        self.w2 = _kaiming_uniform_conv(k2, 64, 32, 4, 4)
        self.w3 = _kaiming_uniform_conv(k3, 64, 64, 3, 3)
        self.b1 = jnp.zeros((32,), jnp.float32)
        self.b2 = jnp.zeros((64,), jnp.float32)
        self.b3 = jnp.zeros((64,), jnp.float32)

        # GEMM layout: lane-dense (Cout padded to 128), bf16 weights.
        self.w1m = _oihw_to_gemm_padded(self.w1, LANE)
        self.w2m = _oihw_to_gemm_padded(self.w2, LANE)
        self.w3m = _oihw_to_gemm_padded(self.w3, LANE)
        self.b1r = _pad_bias_row(self.b1, LANE)
        self.b2r = _pad_bias_row(self.b2, LANE)
        self.b3r = _pad_bias_row(self.b3, LANE)

    def __call__(self, states_nchw):
        batch_size = states_nchw.shape[0]
        x = jnp.transpose(states_nchw, (0, 2, 3, 1))          # NCHW -> NHWC
        x = conv2d_relu_nhwc(x, self.w1m, self.b1r, 8, 8, 4, 32)
        x = conv2d_relu_nhwc(x, self.w2m, self.b2r, 4, 4, 2, 64)
        x = conv2d_relu_nhwc(x, self.w3m, self.b3r, 3, 3, 1, 64,
                             out_dtype=jnp.float32)
        x = jnp.transpose(x, (0, 3, 1, 2))                    # NHWC -> NCHW
        emb = x.reshape(batch_size, -1)                       # == x.view(N, -1)
        assert emb.shape == (batch_size, self.embedding_dim)
        return emb


# ----------------------------------------------------------------------------
# XLA reference with matched bf16 precision (bf16 inputs, f32 accumulation)
# ----------------------------------------------------------------------------
def _ref_forward(model, states_nchw):
    def conv(x, w, b, stride, bf16_out):
        y = jax.lax.conv_general_dilated(
            x.astype(jnp.bfloat16), w.astype(jnp.bfloat16),
            (stride, stride), "VALID",
            dimension_numbers=("NCHW", "OIHW", "NCHW"),
            preferred_element_type=jnp.float32)
        y = jax.nn.relu(y + b[None, :, None, None])
        return y.astype(jnp.bfloat16) if bf16_out else y

    x = conv(states_nchw, model.w1, model.b1, 4, True)
    x = conv(x, model.w2, model.b2, 2, True)
    x = conv(x, model.w3, model.b3, 1, False)
    return x.reshape(x.shape[0], -1)


if __name__ == "__main__":
    key = jax.random.PRNGKey(0)
    k_param, k_input = jax.random.split(key)

    # embedding_dim = 7*7*64 implies the canonical 84x84 Atari frame.
    batch, num_channels, H, W = 2, 4, 84, 84
    states = jax.random.normal(k_input, (batch, num_channels, H, W), jnp.float32)

    model = DQNBasePallas(num_channels=num_channels, key=k_param)

    fwd = jax.jit(model.__call__)
    emb = jax.block_until_ready(fwd(states))

    ref = jax.block_until_ready(_ref_forward(model, states))
    assert emb.shape == (batch, 7 * 7 * 64)
    # bf16 GEMM inputs with f32 accumulation -> relaxed tolerance vs reference.
    assert np.allclose(np.asarray(emb, dtype=np.float32),
                       np.asarray(ref, dtype=np.float32),
                       rtol=5e-2, atol=5e-2)

    print("KERNEL_OK")
</pallas_src>

<mosaic_0001>
module attributes {stable_mosaic.version = 11 : i64} {
  func.func @_matmul_bias_relu_kernel(%arg0: i32, %arg1: memref<800x256xbf16, #tpu.memory_space<vmem>>, %arg2: memref<256x128xbf16, #tpu.memory_space<vmem>>, %arg3: memref<1x128xf32, #tpu.memory_space<vmem>>, %arg4: memref<800x128xbf16, #tpu.memory_space<vmem>>) attributes {dimension_semantics = [#tpu.dimension_semantics<parallel>], iteration_bounds = array<i64: 1>, scalar_prefetch = 0 : i64, scratch_operands = 0 : i64, tpu.core_type = #tpu.core_type<tc>, window_params = [{transform_indices = @transform_0, window_bounds = array<i64: 800, 256>}, {pipeline_mode = #tpu.pipeline_mode<synchronous>, transform_indices = @transform_1, window_bounds = array<i64: 256, 128>}, {pipeline_mode = #tpu.pipeline_mode<synchronous>, transform_indices = @transform_2, window_bounds = array<i64: 1, 128>}, {transform_indices = @transform_3, window_bounds = array<i64: 800, 128>}]} {
    %c0 = arith.constant 0 : index
    %c0_0 = arith.constant 0 : index
    %0 = vector.load %arg1[%c0, %c0_0] : memref<800x256xbf16, #tpu.memory_space<vmem>>, vector<800x256xbf16>
    %c0_1 = arith.constant 0 : index
    %c0_2 = arith.constant 0 : index
    %1 = vector.load %arg2[%c0_1, %c0_2] : memref<256x128xbf16, #tpu.memory_space<vmem>>, vector<256x128xbf16>
    %cst = arith.constant dense<0.000000e+00> : vector<800x128xf32>
    %2 = tpu.matmul %0, %1, %cst {dimension_numbers = #tpu.dot_dimension_numbers<[1], [0], [0], [1], [0, 0, 1, 1], [], []>} : vector<800x256xbf16>, vector<256x128xbf16>, vector<800x128xf32> -> vector<800x128xf32>
    %c0_3 = arith.constant 0 : index
    %c0_4 = arith.constant 0 : index
    %3 = vector.load %arg3[%c0_3, %c0_4] : memref<1x128xf32, #tpu.memory_space<vmem>>, vector<1x128xf32>
    %4 = vector.broadcast %3 : vector<1x128xf32> to vector<800x128xf32>
    %5 = arith.addf %2, %4 : vector<800x128xf32>
    %cst_5 = arith.constant 0.000000e+00 : f32
    %6 = vector.broadcast %cst_5 : f32 to vector<800x128xf32>
    %7 = arith.maximumf %5, %6 : vector<800x128xf32>
    %8 = arith.truncf %7 : vector<800x128xf32> to vector<800x128xbf16>
    %c0_6 = arith.constant 0 : index
    %c0_7 = arith.constant 0 : index
    %9 = vector.load %arg4[%c0_6, %c0_7] : memref<800x128xbf16, #tpu.memory_space<vmem>>, vector<800x128xbf16>
    tpu.vector_store %arg4[%c0_6, %c0_7], %8 {strides = array<i32>} : memref<800x128xbf16, #tpu.memory_space<vmem>>, vector<800x128xbf16>,
    return
  }
  func.func @transform_0(%arg0: i32) -> (i32, i32) {
    %c0_i32 = arith.constant 0 : i32
    %c0_i32_0 = arith.constant 0 : i32
    return %arg0, %c0_i32 : i32, i32
  }
  func.func @transform_1(%arg0: i32) -> (i32, i32) {
    %c0_i32 = arith.constant 0 : i32
    %c0_i32_0 = arith.constant 0 : i32
    %c0_i32_1 = arith.constant 0 : i32
    return %c0_i32, %c0_i32_0 : i32, i32
  }
  func.func @transform_2(%arg0: i32) -> (i32, i32) {
    %c0_i32 = arith.constant 0 : i32
    %c0_i32_0 = arith.constant 0 : i32
    %c0_i32_1 = arith.constant 0 : i32
    return %c0_i32, %c0_i32_0 : i32, i32
  }
  func.func @transform_3(%arg0: i32) -> (i32, i32) {
    %c0_i32 = arith.constant 0 : i32
    %c0_i32_0 = arith.constant 0 : i32
    return %arg0, %c0_i32 : i32, i32
  }
}

module attributes {stable_mosaic.version = 11 : i64} {
  func.func @_matmul_bias_relu_kernel(%arg0: i32, %arg1: memref<176x512xbf16, #tpu.memory_space<vmem>>, %arg2: memref<512x128xbf16, #tpu.memory_space<vmem>>, %arg3: memref<1x128xf32, #tpu.memory_space<vmem>>, %arg4: memref<176x128xbf16, #tpu.memory_space<vmem>>) attributes {dimension_semantics = [#tpu.dimension_semantics<parallel>], iteration_bounds = array<i64: 1>, scalar_prefetch = 0 : i64, scratch_operands = 0 : i64, tpu.core_type = #tpu.core_type<tc>, window_params = [{transform_indices = @transform_0, window_bounds = array<i64: 176, 512>}, {pipeline_mode = #tpu.pipeline_mode<synchronous>, transform_indices = @transform_1, window_bounds = array<i64: 512, 128>}, {pipeline_mode = #tpu.pipeline_mode<synchronous>, transform_indices = @transform_2, window_bounds = array<i64: 1, 128>}, {transform_indices = @transform_3, window_bounds = array<i64: 176, 128>}]} {
    %c0 = arith.constant 0 : index
    %c0_0 = arith.constant 0 : index
    %0 = vector.load %arg1[%c0, %c0_0] : memref<176x512xbf16, #tpu.memory_space<vmem>>, vector<176x512xbf16>
    %c0_1 = arith.constant 0 : index
    %c0_2 = arith.constant 0 : index
    %1 = vector.load %arg2[%c0_1, %c0_2] : memref<512x128xbf16, #tpu.memory_space<vmem>>, vector<512x128xbf16>
    %cst = arith.constant dense<0.000000e+00> : vector<176x128xf32>
    %2 = tpu.matmul %0, %1, %cst {dimension_numbers = #tpu.dot_dimension_numbers<[1], [0], [0], [1], [0, 0, 1, 1], [], []>} : vector<176x512xbf16>, vector<512x128xbf16>, vector<176x128xf32> -> vector<176x128xf32>
    %c0_3 = arith.constant 0 : index
    %c0_4 = arith.constant 0 : index
    %3 = vector.load %arg3[%c0_3, %c0_4] : memref<1x128xf32, #tpu.memory_space<vmem>>, vector<1x128xf32>
    %4 = vector.broadcast %3 : vector<1x128xf32> to vector<176x128xf32>
    %5 = arith.addf %2, %4 : vector<176x128xf32>
    %cst_5 = arith.constant 0.000000e+00 : f32
    %6 = vector.broadcast %cst_5 : f32 to vector<176x128xf32>
    %7 = arith.maximumf %5, %6 : vector<176x128xf32>
    %8 = arith.truncf %7 : vector<176x128xf32> to vector<176x128xbf16>
    %c0_6 = arith.constant 0 : index
    %c0_7 = arith.constant 0 : index
    %9 = vector.load %arg4[%c0_6, %c0_7] : memref<176x128xbf16, #tpu.memory_space<vmem>>, vector<176x128xbf16>
    tpu.vector_store %arg4[%c0_6, %c0_7], %8 {strides = array<i32>} : memref<176x128xbf16, #tpu.memory_space<vmem>>, vector<176x128xbf16>,
    return
  }
  func.func @transform_0(%arg0: i32) -> (i32, i32) {
    %c0_i32 = arith.constant 0 : i32
    %c0_i32_0 = arith.constant 0 : i32
    return %arg0, %c0_i32 : i32, i32
  }
  func.func @transform_1(%arg0: i32) -> (i32, i32) {
    %c0_i32 = arith.constant 0 : i32
    %c0_i32_0 = arith.constant 0 : i32
    %c0_i32_1 = arith.constant 0 : i32
    return %c0_i32, %c0_i32_0 : i32, i32
  }
  func.func @transform_2(%arg0: i32) -> (i32, i32) {
    %c0_i32 = arith.constant 0 : i32
    %c0_i32_0 = arith.constant 0 : i32
    %c0_i32_1 = arith.constant 0 : i32
    return %c0_i32, %c0_i32_0 : i32, i32
  }
  func.func @transform_3(%arg0: i32) -> (i32, i32) {
    %c0_i32 = arith.constant 0 : i32
    %c0_i32_0 = arith.constant 0 : i32
    return %arg0, %c0_i32 : i32, i32
  }
}

module attributes {stable_mosaic.version = 11 : i64} {
  func.func @_matmul_bias_relu_kernel(%arg0: i32, %arg1: memref<112x576xbf16, #tpu.memory_space<vmem>>, %arg2: memref<576x128xbf16, #tpu.memory_space<vmem>>, %arg3: memref<1x128xf32, #tpu.memory_space<vmem>>, %arg4: memref<112x128xf32, #tpu.memory_space<vmem>>) attributes {dimension_semantics = [#tpu.dimension_semantics<parallel>], iteration_bounds = array<i64: 1>, scalar_prefetch = 0 : i64, scratch_operands = 0 : i64, tpu.core_type = #tpu.core_type<tc>, window_params = [{transform_indices = @transform_0, window_bounds = array<i64: 112, 576>}, {pipeline_mode = #tpu.pipeline_mode<synchronous>, transform_indices = @transform_1, window_bounds = array<i64: 576, 128>}, {pipeline_mode = #tpu.pipeline_mode<synchronous>, transform_indices = @transform_2, window_bounds = array<i64: 1, 128>}, {transform_indices = @transform_3, window_bounds = array<i64: 112, 128>}]} {
    %c0 = arith.constant 0 : index
    %c0_0 = arith.constant 0 : index
    %0 = vector.load %arg1[%c0, %c0_0] : memref<112x576xbf16, #tpu.memory_space<vmem>>, vector<112x576xbf16>
    %c0_1 = arith.constant 0 : index
    %c0_2 = arith.constant 0 : index
    %1 = vector.load %arg2[%c0_1, %c0_2] : memref<576x128xbf16, #tpu.memory_space<vmem>>, vector<576x128xbf16>
    %cst = arith.constant dense<0.000000e+00> : vector<112x128xf32>
    %2 = tpu.matmul %0, %1, %cst {dimension_numbers = #tpu.dot_dimension_numbers<[1], [0], [0], [1], [0, 0, 1, 1], [], []>} : vector<112x576xbf16>, vector<576x128xbf16>, vector<112x128xf32> -> vector<112x128xf32>
    %c0_3 = arith.constant 0 : index
    %c0_4 = arith.constant 0 : index
    %3 = vector.load %arg3[%c0_3, %c0_4] : memref<1x128xf32, #tpu.memory_space<vmem>>, vector<1x128xf32>
    %4 = vector.broadcast %3 : vector<1x128xf32> to vector<112x128xf32>
    %5 = arith.addf %2, %4 : vector<112x128xf32>
    %cst_5 = arith.constant 0.000000e+00 : f32
    %6 = vector.broadcast %cst_5 : f32 to vector<112x128xf32>
    %7 = arith.maximumf %5, %6 : vector<112x128xf32>
    %c0_6 = arith.constant 0 : index
    %c0_7 = arith.constant 0 : index
    %8 = vector.load %arg4[%c0_6, %c0_7] : memref<112x128xf32, #tpu.memory_space<vmem>>, vector<112x128xf32>
    tpu.vector_store %arg4[%c0_6, %c0_7], %7 {strides = array<i32>} : memref<112x128xf32, #tpu.memory_space<vmem>>, vector<112x128xf32>,
    return
  }
  func.func @transform_0(%arg0: i32) -> (i32, i32) {
    %c0_i32 = arith.constant 0 : i32
    %c0_i32_0 = arith.constant 0 : i32
    return %arg0, %c0_i32 : i32, i32
  }
  func.func @transform_1(%arg0: i32) -> (i32, i32) {
    %c0_i32 = arith.constant 0 : i32
    %c0_i32_0 = arith.constant 0 : i32
    %c0_i32_1 = arith.constant 0 : i32
    return %c0_i32, %c0_i32_0 : i32, i32
  }
  func.func @transform_2(%arg0: i32) -> (i32, i32) {
    %c0_i32 = arith.constant 0 : i32
    %c0_i32_0 = arith.constant 0 : i32
    %c0_i32_1 = arith.constant 0 : i32
    return %c0_i32, %c0_i32_0 : i32, i32
  }
  func.func @transform_3(%arg0: i32) -> (i32, i32) {
    %c0_i32 = arith.constant 0 : i32
    %c0_i32_0 = arith.constant 0 : i32
    return %arg0, %c0_i32 : i32, i32
  }
}

</mosaic_0001>

<bundles_post_ra>
// kernel: a_call__.3
= control target key start
LH: loop header
LB: loop body
LE: loop exit
PB: predicated region body
PF: predicated region fallthrough
CT: control target
= control target key end

     0   :  { %s3393_s1 = inlined_call_operand.vmem [shape: bf16[256,128], index: 1, kind: input, shape index: {}]   ;;  %s3394_s2 = inlined_call_operand.vmem [shape: f32[1,128], index: 2, kind: input, shape index: {}]   ;;  %s3395_s0 = inlined_call_operand.vmem [shape: bf16[800,256], index: 0, kind: input, shape index: {}]   ;;  %s3396_s3 = inlined_call_operand.vmem [shape: bf16[800,128], index: 3, kind: output, shape index: {}]  }
   0x1   :  { %v2139_v0 = vld [vmem:[%s3393_s1 + $0x38] sm:$0xff]  ;;  %v2138_v2 = vld [vmem:[%s3393_s1 + $0x30] sm:$0xff]  ;;  %v2137_v4 = vld [vmem:[%s3393_s1 + $0x28] sm:$0xff] }
   0x2   :  { %v2147_v1 = vld [vmem:[%s3393_s1 + $0x78] sm:$0xff]  ;;  %746 = vmatpush.bf16.msra.mxu0 %v2139_v0  ;;  %2447 = vmatpush.bf16.msra.mxu2 %v2139_v0  ;;  %v2146_v3 = vld [vmem:[%s3393_s1 + $0x70] sm:$0xff]  ;;  %v2145_v5 = vld [vmem:[%s3393_s1 + $0x68] sm:$0xff] }
   0x3   :  { %1005 = vmatpush.bf16.msra.mxu1 %v2147_v1  ;;  %2455 = vmatpush.bf16.msra.mxu3 %v2147_v1  ;;  %v2136_v6 = vld [vmem:[%s3393_s1 + $0x20] sm:$0xff]  ;;  %v2135_v8 = vld [vmem:[%s3393_s1 + $0x18] sm:$0xff]  ;;  %v2134_v10 = vld [vmem:[%s3393_s1 + $0x10] sm:$0xff] }
   0x4   :  { %v2144_v7 = vld [vmem:[%s3393_s1 + $0x60] sm:$0xff]  ;;  %v2143_v9 = vld [vmem:[%s3393_s1 + $0x58] sm:$0xff]  ;;  %v2142_v11 = vld [vmem:[%s3393_s1 + $0x50] sm:$0xff] }
   0x5   :  { %v2133_v12 = vld [vmem:[%s3393_s1 + $0x8] sm:$0xff]  ;;  %v2132_v14 = vld [vmem:[%s3393_s1] sm:$0xff]  ;;  %v1770_v18 = vld [vmem:[%s3395_s0 + $0x190] sm:$0xf] }
   0x6   :  { %747 = vmatpush.bf16.msra.mxu0 %v2138_v2  ;;  %2448 = vmatpush.bf16.msra.mxu2 %v2138_v2  ;;  %v2141_v13 = vld [vmem:[%s3393_s1 + $0x48] sm:$0xff]  ;;  %v2140_v15 = vld [vmem:[%s3393_s1 + $0x40] sm:$0xff]  ;;  %v2083_v19 = vld [vmem:[%s3395_s0 + $0x194] sm:$0xf0] }
   0x7   :  { %1006 = vmatpush.bf16.msra.mxu1 %v2146_v3  ;;  %2456 = vmatpush.bf16.msra.mxu3 %v2146_v3  ;;  %v1570_v16 = vld [vmem:[%s3395_s0] sm:$0xf]  ;;  %v2033_v17 = vld [vmem:[%s3395_s0 + $0x4] sm:$0xf0]  ;;  %v2032_v20 = vld [vmem:[%s3395_s0 + $0x4] sm:$0xf]  ;;  %v1771_v25 = vor.u32 %v2083_v19, %v1770_v18 }
   0x8   :  { %v1572_v21 = vld [vmem:[%s3395_s0 + $0x8] sm:$0xf0]  ;;  %v2082_v22 = vld [vmem:[%s3395_s0 + $0x194] sm:$0xf]  ;;  %v1772_v23 = vld [vmem:[%s3395_s0 + $0x198] sm:$0xf0]  ;;  %v1571_v24 = vor.u32 %v2033_v17, %v1570_v16 }
   0x9   :  { %v1575_v26 = vor.u32 %v2032_v20, %v1572_v21  ;;  %v1775_v27 = vor.u32 %v2082_v22, %v1772_v23  ;;  %v1578_v28 = vld [vmem:[%s3395_s0 + $0x10] sm:$0xf]  ;;  %v2035_v29 = vld [vmem:[%s3395_s0 + $0x14] sm:$0xf0]  ;;  %v1778_v30 = vld [vmem:[%s3395_s0 + $0x1a0] sm:$0xf] }
   0xa   :  { %748 = vmatpush.bf16.msra.mxu0 %v2137_v4  ;;  %2449 = vmatpush.bf16.msra.mxu2 %v2137_v4  ;;  %v2085_v31 = vld [vmem:[%s3395_s0 + $0x1a4] sm:$0xf0]  ;;  %v2034_v32 = vld [vmem:[%s3395_s0 + $0x14] sm:$0xf]  ;;  %v1580_v33 = vld [vmem:[%s3395_s0 + $0x18] sm:$0xf0]  ;;  %v1579_v36 = vor.u32 %v2035_v29, %v1578_v28 }
   0xb   :  { %1007 = vmatpush.bf16.msra.mxu1 %v2145_v5  ;;  %2457 = vmatpush.bf16.msra.mxu3 %v2145_v5  ;;  %v2084_v34 = vld [vmem:[%s3395_s0 + $0x1a4] sm:$0xf]  ;;  %v1780_v35 = vld [vmem:[%s3395_s0 + $0x1a8] sm:$0xf0]  ;;  %v1779_v37 = vor.u32 %v2085_v31, %v1778_v30  ;;  %v1583_v38 = vor.u32 %v2034_v32, %v1580_v33  ;;  %v1586_v40 = vld [vmem:[%s3395_s0 + $0x20] sm:$0xf] }
   0xc   :  { %v1783_v39 = vor.u32 %v2084_v34, %v1780_v35  ;;  %v2037_v41 = vld [vmem:[%s3395_s0 + $0x24] sm:$0xf0]  ;;  %v1786_v42 = vld [vmem:[%s3395_s0 + $0x1b0] sm:$0xf]  ;;  %v2087_v43 = vld [vmem:[%s3395_s0 + $0x1b4] sm:$0xf0] }
   0xd   :  { %v2036_v44 = vld [vmem:[%s3395_s0 + $0x24] sm:$0xf]  ;;  %v1588_v45 = vld [vmem:[%s3395_s0 + $0x28] sm:$0xf0]  ;;  %v2086_v46 = vld [vmem:[%s3395_s0 + $0x1b4] sm:$0xf]  ;;  %v1587_v48 = vor.u32 %v2037_v41, %v1586_v40  ;;  %v1787_v49 = vor.u32 %v2087_v43, %v1786_v42 }
   0xe   :  { %749 = vmatpush.bf16.msra.mxu0 %v2136_v6  ;;  %2450 = vmatpush.bf16.msra.mxu2 %v2136_v6  ;;  %v1788_v47 = vld [vmem:[%s3395_s0 + $0x1b8] sm:$0xf0]  ;;  %v1591_v50 = vor.u32 %v2036_v44, %v1588_v45  ;;  %v1594_v52 = vld [vmem:[%s3395_s0 + $0x30] sm:$0xf]  ;;  %v2039_v53 = vld [vmem:[%s3395_s0 + $0x34] sm:$0xf0] }
   0xf   :  { %1008 = vmatpush.bf16.msra.mxu1 %v2144_v7  ;;  %2458 = vmatpush.bf16.msra.mxu3 %v2144_v7  ;;  %v1791_v51 = vor.u32 %v2086_v46, %v1788_v47  ;;  %v1794_v54 = vld [vmem:[%s3395_s0 + $0x1c0] sm:$0xf]  ;;  %v2089_v55 = vld [vmem:[%s3395_s0 + $0x1c4] sm:$0xf0]  ;;  %v2038_v56 = vld [vmem:[%s3395_s0 + $0x34] sm:$0xf]  ;;  %v1595_v60 = vor.u32 %v2039_v53, %v1594_v52 }
  0x10   :  { %v1596_v57 = vld [vmem:[%s3395_s0 + $0x38] sm:$0xf0]  ;;  %v2088_v58 = vld [vmem:[%s3395_s0 + $0x1c4] sm:$0xf]  ;;  %v1796_v59 = vld [vmem:[%s3395_s0 + $0x1c8] sm:$0xf0]  ;;  %v1795_v61 = vor.u32 %v2089_v55, %v1794_v54 }
  0x11   :  { %v1599_v62 = vor.u32 %v2038_v56, %v1596_v57  ;;  %v1799_v63 = vor.u32 %v2088_v58, %v1796_v59  ;;  %v1602_v0 = vld [vmem:[%s3395_s0 + $0x40] sm:$0xf]  ;;  %v2041_v1 = vld [vmem:[%s3395_s0 + $0x44] sm:$0xf0]  ;;  %v1802_v2 = vld [vmem:[%s3395_s0 + $0x1d0] sm:$0xf] }
  0x12   :  { %750 = vmatpush.bf16.msra.mxu0 %v2135_v8  ;;  %2451 = vmatpush.bf16.msra.mxu2 %v2135_v8  ;;  %v2091_v3 = vld [vmem:[%s3395_s0 + $0x1d4] sm:$0xf0]  ;;  %v2040_v4 = vld [vmem:[%s3395_s0 + $0x44] sm:$0xf]  ;;  %v1604_v5 = vld [vmem:[%s3395_s0 + $0x48] sm:$0xf0]  ;;  %v1603_v8 = vor.u32 %v2041_v1, %v1602_v0 }
  0x13   :  { %1009 = vmatpush.bf16.msra.mxu1 %v2143_v9  ;;  %2459 = vmatpush.bf16.msra.mxu3 %v2143_v9  ;;  %v2090_v6 = vld [vmem:[%s3395_s0 + $0x1d4] sm:$0xf]  ;;  %v1804_v7 = vld [vmem:[%s3395_s0 + $0x1d8] sm:$0xf0]  ;;  %v1803_v9 = vor.u32 %v2091_v3, %v1802_v2  ;;  %v2092_v18 = vld [vmem:[%s3395_s0 + $0x1e4] sm:$0xf] }
  0x14   :  { %v2042_v16 = vld [vmem:[%s3395_s0 + $0x54] sm:$0xf]  ;;  %v1612_v17 = vld [vmem:[%s3395_s0 + $0x58] sm:$0xf0]  ;;  %v1812_v19 = vld [vmem:[%s3395_s0 + $0x1e8] sm:$0xf0] }
  0x15   :  { %v1615_v22 = vor.u32 %v2042_v16, %v1612_v17  ;;  %v1815_v23 = vor.u32 %v2092_v18, %v1812_v19  ;;  %v2044_v28 = vld [vmem:[%s3395_s0 + $0x64] sm:$0xf]  ;;  %v1620_v29 = vld [vmem:[%s3395_s0 + $0x68] sm:$0xf0]  ;;  %v2094_v30 = vld [vmem:[%s3395_s0 + $0x1f4] sm:$0xf] }
  0x16   :  { %751 = vmatpush.bf16.msra.mxu0 %v2134_v10  ;;  %2452 = vmatpush.bf16.msra.mxu2 %v2134_v10  ;;  %v1607_v10 = vor.u32 %v2040_v4, %v1604_v5  ;;  %v1820_v31 = vld [vmem:[%s3395_s0 + $0x1f8] sm:$0xf0]  ;;  %v1623_v34 = vor.u32 %v2044_v28, %v1620_v29  ;;  %v2046_v40 = vld [vmem:[%s3395_s0 + $0x74] sm:$0xf]  ;;  %v2096_v42 = vld [vmem:[%s3395_s0 + $0x204] sm:$0xf] }
  0x17   :  { %1010 = vmatpush.bf16.msra.mxu1 %v2142_v11  ;;  %2460 = vmatpush.bf16.msra.mxu3 %v2142_v11  ;;  %v1807_v11 = vor.u32 %v2090_v6, %v1804_v7  ;;  %v1823_v35 = vor.u32 %v2094_v30, %v1820_v31  ;;  %v1628_v41 = vld [vmem:[%s3395_s0 + $0x78] sm:$0xf0]  ;;  %v1828_v43 = vld [vmem:[%s3395_s0 + $0x208] sm:$0xf0]  ;;  %v2048_v52 = vld [vmem:[%s3395_s0 + $0x84] sm:$0xf] }
  0x18   :  { %v1631_v46 = vor.u32 %v2046_v40, %v1628_v41  ;;  %v1831_v47 = vor.u32 %v2096_v42, %v1828_v43  ;;  %v1636_v53 = vld [vmem:[%s3395_s0 + $0x88] sm:$0xf0]  ;;  %v2098_v54 = vld [vmem:[%s3395_s0 + $0x214] sm:$0xf]  ;;  %v1836_v55 = vld [vmem:[%s3395_s0 + $0x218] sm:$0xf0] }
  0x19   :  { %v1639_v59 = vor.u32 %v2048_v52, %v1636_v53  ;;  %v2100_v16 = vld [vmem:[%s3395_s0 + $0x224] sm:$0xf]  ;;  %v1844_v17 = vld [vmem:[%s3395_s0 + $0x228] sm:$0xf0]  ;;  %v1650_v42 = vld [vmem:[%s3395_s0 + $0xa0] sm:$0xf] }
  0x1a   :  { %752 = vmatpush.bf16.msra.mxu0 %v2133_v12  ;;  %2453 = vmatpush.bf16.msra.mxu2 %v2133_v12  ;;  %v1610_v12 = vld [vmem:[%s3395_s0 + $0x50] sm:$0xf]  ;;  %v2053_v43 = vld [vmem:[%s3395_s0 + $0xa4] sm:$0xf0] }
  0x1b   :  { %1011 = vmatpush.bf16.msra.mxu1 %v2141_v13  ;;  %2461 = vmatpush.bf16.msra.mxu3 %v2141_v13  ;;  %v2043_v13 = vld [vmem:[%s3395_s0 + $0x54] sm:$0xf0]  ;;  %v1651_v53 = vor.u32 %v2053_v43, %v1650_v42 }
  0x1c   :  { %v1611_v20 = vor.u32 %v2043_v13, %v1610_v12  ;;  %v2050_v12 = vld [vmem:[%s3395_s0 + $0x94] sm:$0xf]  ;;  %v1644_v13 = vld [vmem:[%s3395_s0 + $0x98] sm:$0xf0] }
  0x1e   :  { %753 = vmatpush.bf16.msra.mxu0 %v2132_v14  ;;  %2454 = vmatpush.bf16.msra.mxu2 %v2132_v14  ;;  %v1810_v14 = vld [vmem:[%s3395_s0 + $0x1e0] sm:$0xf] }
  0x1f   :  { %1012 = vmatpush.bf16.msra.mxu1 %v2140_v15  ;;  %2462 = vmatpush.bf16.msra.mxu3 %v2140_v15  ;;  %v2093_v15 = vld [vmem:[%s3395_s0 + $0x1e4] sm:$0xf0] }
  0x20   :  { %v1811_v21 = vor.u32 %v2093_v15, %v1810_v14 }
  0x21   :  { %754 = vmatmul.bf16.vlgmr.msra.gmra.mxu0 %v1571_v24  ;;  %879 = vmatmul.bf16.vlgmr.msra.gmra.mxu2 %v1771_v25  ;;  %v1618_v24 = vld [vmem:[%s3395_s0 + $0x60] sm:$0xf]  ;;  %v2045_v25 = vld [vmem:[%s3395_s0 + $0x64] sm:$0xf0] }
  0x22   :  { %1013 = vmatmul.bf16.vlgmr.msra.gmra.mxu1 %v1575_v26  ;;  %1138 = vmatmul.bf16.vlgmr.msra.gmra.mxu3 %v1775_v27  ;;  %v1818_v26 = vld [vmem:[%s3395_s0 + $0x1f0] sm:$0xf]  ;;  %v2095_v27 = vld [vmem:[%s3395_s0 + $0x1f4] sm:$0xf0]  ;;  %v1619_v32 = vor.u32 %v2045_v25, %v1618_v24 }
  0x23   :  { %v1819_v33 = vor.u32 %v2095_v27, %v1818_v26  ;;  %v1647_v26 = vor.u32 %v2050_v12, %v1644_v13  ;;  %v1847_v27 = vor.u32 %v2100_v16, %v1844_v17  ;;  %v1658_v13 = vld [vmem:[%s3395_s0 + $0xb0] sm:$0xf]  ;;  %v2105_v16 = vld [vmem:[%s3395_s0 + $0x244] sm:$0xf0]  ;;  %v2054_v17 = vld [vmem:[%s3395_s0 + $0xb4] sm:$0xf] }
  0x31   :  { %759 = vmatmul.bf16.gmra.mxu0 %v1579_v36  ;;  %884 = vmatmul.bf16.gmra.mxu2 %v1779_v37  ;;  %v1626_v36 = vld [vmem:[%s3395_s0 + $0x70] sm:$0xf]  ;;  %v2047_v37 = vld [vmem:[%s3395_s0 + $0x74] sm:$0xf0] }
  0x32   :  { %1018 = vmatmul.bf16.gmra.mxu1 %v1583_v38  ;;  %1143 = vmatmul.bf16.gmra.mxu3 %v1783_v39  ;;  %v1826_v38 = vld [vmem:[%s3395_s0 + $0x200] sm:$0xf]  ;;  %v2097_v39 = vld [vmem:[%s3395_s0 + $0x204] sm:$0xf0]  ;;  %v1627_v44 = vor.u32 %v2047_v37, %v1626_v36 }
  0x33   :  { %v1827_v45 = vor.u32 %v2097_v39, %v1826_v38 }
  0x41   :  { %764 = vmatmul.bf16.gmra.mxu0 %v1587_v48  ;;  %889 = vmatmul.bf16.gmra.mxu2 %v1787_v49  ;;  %v1634_v48 = vld [vmem:[%s3395_s0 + $0x80] sm:$0xf]  ;;  %v2049_v49 = vld [vmem:[%s3395_s0 + $0x84] sm:$0xf0] }
  0x42   :  { %1023 = vmatmul.bf16.gmra.mxu1 %v1591_v50  ;;  %1148 = vmatmul.bf16.gmra.mxu3 %v1791_v51  ;;  %v1834_v50 = vld [vmem:[%s3395_s0 + $0x210] sm:$0xf]  ;;  %v2099_v51 = vld [vmem:[%s3395_s0 + $0x214] sm:$0xf0]  ;;  %v1635_v56 = vor.u32 %v2049_v49, %v1634_v48 }
  0x43   :  { %v1835_v57 = vor.u32 %v2099_v51, %v1834_v50  ;;  %v2102_v50 = vld [vmem:[%s3395_s0 + $0x234] sm:$0xf]  ;;  %v1852_v51 = vld [vmem:[%s3395_s0 + $0x238] sm:$0xf0] }
  0x51   :  { %769 = vmatmul.bf16.gmra.mxu0 %v1595_v60  ;;  %894 = vmatmul.bf16.gmra.mxu2 %v1795_v61  ;;  %v1839_v60 = vor.u32 %v2098_v54, %v1836_v55  ;;  %v2752_v61 = vld [vmem:[%s3394_s2] ss:$0 sm:$0xff] }
  0x52   :  { %1028 = vmatmul.bf16.gmra.mxu1 %v1599_v62  ;;  %1153 = vmatmul.bf16.gmra.mxu3 %v1799_v63 }
  0x61   :  { %774 = vmatmul.bf16.gmra.mxu0 %v1603_v8  ;;  %899 = vmatmul.bf16.gmra.mxu2 %v1803_v9  ;;  %v1642_v8 = vld [vmem:[%s3395_s0 + $0x90] sm:$0xf]  ;;  %v2051_v9 = vld [vmem:[%s3395_s0 + $0x94] sm:$0xf0] }
  0x62   :  { %1033 = vmatmul.bf16.gmra.mxu1 %v1607_v10  ;;  %1158 = vmatmul.bf16.gmra.mxu3 %v1807_v11  ;;  %v1842_v10 = vld [vmem:[%s3395_s0 + $0x220] sm:$0xf]  ;;  %v2101_v11 = vld [vmem:[%s3395_s0 + $0x224] sm:$0xf0]  ;;  %v1643_v19 = vor.u32 %v2051_v9, %v1642_v8 }
  0x63   :  { %v1843_v24 = vor.u32 %v2101_v11, %v1842_v10 }
  0x71   :  { %779 = vmatmul.bf16.gmra.mxu0 %v1611_v20  ;;  %904 = vmatmul.bf16.gmra.mxu2 %v1811_v21 }
  0x72   :  { %1038 = vmatmul.bf16.gmra.mxu1 %v1615_v22  ;;  %1163 = vmatmul.bf16.gmra.mxu3 %v1815_v23 }
  0x81   :  { %784 = vmatmul.bf16.gmra.mxu0 %v1619_v32  ;;  %909 = vmatmul.bf16.gmra.mxu2 %v1819_v33 }
  0x82   :  { %1043 = vmatmul.bf16.gmra.mxu1 %v1623_v34  ;;  %1168 = vmatmul.bf16.gmra.mxu3 %v1823_v35 }
  0x91   :  { %789 = vmatmul.bf16.gmra.mxu0 %v1627_v44  ;;  %914 = vmatmul.bf16.gmra.mxu2 %v1827_v45  ;;  %v1850_v44 = vld [vmem:[%s3395_s0 + $0x230] sm:$0xf]  ;;  %v2103_v45 = vld [vmem:[%s3395_s0 + $0x234] sm:$0xf0] }
  0x92   :  { %1048 = vmatmul.bf16.gmra.mxu1 %v1631_v46  ;;  %1173 = vmatmul.bf16.gmra.mxu3 %v1831_v47  ;;  %v2052_v46 = vld [vmem:[%s3395_s0 + $0xa4] sm:$0xf]  ;;  %v1652_v47 = vld [vmem:[%s3395_s0 + $0xa8] sm:$0xf0] }
  0x9e   :  { %v755_v58 = vpop.f32.mrf.mxu0 }
  0x9f   :  { %v1014_v62 = vpop.f32.mrf.mxu1  ;;  %v756_v63 = vadd.f32 %v2752_v61, %v755_v58  ;;  %v1851_v58 = vor.u32 %v2103_v45, %v1850_v44 }
  0xa1   :  { %794 = vmatmul.bf16.gmra.mxu0 %v1635_v56  ;;  %919 = vmatmul.bf16.gmra.mxu2 %v1835_v57  ;;  %v1015_v3 = vadd.f32 %v1014_v62, %v756_v63  ;;  %v1855_v62 = vor.u32 %v2102_v50, %v1852_v51  ;;  %v2107_v50 = vld [vmem:[%s3395_s0 + $0x254] sm:$0xf0]  ;;  %v2056_v51 = vld [vmem:[%s3395_s0 + $0xc4] sm:$0xf] }
  0xa2   :  { %1053 = vmatmul.bf16.gmra.mxu1 %v1639_v59  ;;  %1178 = vmatmul.bf16.gmra.mxu3 %v1839_v60  ;;  %v1655_v60 = vor.u32 %v2052_v46, %v1652_v47  ;;  %v1666_v47 = vld [vmem:[%s3395_s0 + $0xc0] sm:$0xf] }
  0xa3   :  { %v1264_v14 = vmax.f32 %v1015_v3, 0.0 }
  0xa4   :  { %v880_v0 = vpop.f32.mrf.mxu2 }
  0xa5   :  { %v1139_v1 = vpop.f32.mrf.mxu3  ;;  %v881_v6 = vadd.f32 %v2752_v61, %v880_v0 }
  0xa6   :  { %v757_v2 = vpop.f32.mrf.mxu0 }
  0xa7   :  { %v758_v4 = vadd.f32 %v2752_v61, %v757_v2  ;;  %v1016_v5 = vpop.f32.mrf.mxu1  ;;  %v1140_v20 = vadd.f32 %v1139_v1, %v881_v6 }
  0xa9   :  { %v1017_v7 = vadd.f32 %v1016_v5, %v758_v4  ;;  %v1314_v30 = vmax.f32 %v1140_v20, 0.0 }
  0xab   :  { %v1265_v15 = vmax.f32 %v1017_v7, 0.0 }
  0xac   :  { %v882_v18 = vpop.f32.mrf.mxu2 }
  0xad   :  { %v2151_v21 = vpack.c.bf16 %v1265_v15, %v1264_v14  ;;  %v883_v22 = vadd.f32 %v2752_v61, %v882_v18  ;;  %v1141_v23 = vpop.f32.mrf.mxu3  ;;  %v2055_v14 = vld [vmem:[%s3395_s0 + $0xb4] sm:$0xf0]  ;;  %v1858_v15 = vld [vmem:[%s3395_s0 + $0x240] sm:$0xf]  ;;  %v1660_v18 = vld [vmem:[%s3395_s0 + $0xb8] sm:$0xf0] }
  0xae   :  { %v760_v25 = vpop.f32.mrf.mxu0 }
  0xaf   :  { %2152 = vst [vmem:[%s3396_s3] sm:$0xff] %v2151_v21   ;;  %v1142_v28 = vadd.f32 %v1141_v23, %v883_v22  ;;  %v1019_v29 = vpop.f32.mrf.mxu1  ;;  %v761_v33 = vadd.f32 %v2752_v61, %v760_v25  ;;  %v2104_v21 = vld [vmem:[%s3395_s0 + $0x244] sm:$0xf]  ;;  %v1860_v22 = vld [vmem:[%s3395_s0 + $0x248] sm:$0xf0] }
  0xb1   :  { %v1315_v31 = vmax.f32 %v1142_v28, 0.0  ;;  %799 = vmatmul.bf16.gmra.mxu0 %v1643_v19  ;;  %924 = vmatmul.bf16.gmra.mxu2 %v1843_v24  ;;  %v1020_v37 = vadd.f32 %v1019_v29, %v761_v33  ;;  %v1659_v24 = vor.u32 %v2055_v14, %v1658_v13  ;;  %v1859_v29 = vor.u32 %v2105_v16, %v1858_v15 }
  0xb2   :  { %1058 = vmatmul.bf16.gmra.mxu1 %v1647_v26  ;;  %1183 = vmatmul.bf16.gmra.mxu3 %v1847_v27 }
  0xb3   :  { %v2276_v32 = vpack.c.bf16 %v1315_v31, %v1314_v30  ;;  %v1266_v48 = vmax.f32 %v1020_v37, 0.0  ;;  %v1663_v31 = vor.u32 %v2054_v17, %v1660_v18  ;;  %v1674_v18 = vld [vmem:[%s3395_s0 + $0xd0] sm:$0xf] }
  0xb4   :  { %v885_v34 = vpop.f32.mrf.mxu2 }
  0xb5   :  { %2422 = vst [vmem:[%s3396_s3 + $0xc8] sm:$0xff] %v2276_v32   ;;  %v1144_v35 = vpop.f32.mrf.mxu3  ;;  %v886_v40 = vadd.f32 %v2752_v61, %v885_v34  ;;  %v1863_v32 = vor.u32 %v2104_v21, %v1860_v22  ;;  %v2109_v21 = vld [vmem:[%s3395_s0 + $0x264] sm:$0xf0]  ;;  %v2058_v22 = vld [vmem:[%s3395_s0 + $0xd4] sm:$0xf] }
  0xb6   :  { %v762_v36 = vpop.f32.mrf.mxu0 }
  0xb7   :  { %v763_v38 = vadd.f32 %v2752_v61, %v762_v36  ;;  %v1021_v39 = vpop.f32.mrf.mxu1  ;;  %v1145_v54 = vadd.f32 %v1144_v35, %v886_v40 }
  0xb9   :  { %v1022_v41 = vadd.f32 %v1021_v39, %v763_v38  ;;  %v1316_v1 = vmax.f32 %v1145_v54, 0.0 }
  0xbb   :  { %v1267_v49 = vmax.f32 %v1022_v41, 0.0 }
  0xbc   :  { %v887_v52 = vpop.f32.mrf.mxu2 }
  0xbd   :  { %v2156_v55 = vpack.c.bf16 %v1267_v49, %v1266_v48  ;;  %v888_v56 = vadd.f32 %v2752_v61, %v887_v52  ;;  %v1146_v57 = vpop.f32.mrf.mxu3  ;;  %v2057_v48 = vld [vmem:[%s3395_s0 + $0xc4] sm:$0xf0]  ;;  %v1866_v49 = vld [vmem:[%s3395_s0 + $0x250] sm:$0xf]  ;;  %v1668_v52 = vld [vmem:[%s3395_s0 + $0xc8] sm:$0xf0] }
  0xbe   :  { %v765_v59 = vpop.f32.mrf.mxu0 }
  0xbf   :  { %2398 = vst [vmem:[%s3396_s3 + $0x8] sm:$0xff] %v2156_v55   ;;  %v1147_v63 = vadd.f32 %v1146_v57, %v888_v56  ;;  %v1024_v0 = vpop.f32.mrf.mxu1  ;;  %v766_v4 = vadd.f32 %v2752_v61, %v765_v59  ;;  %v2106_v55 = vld [vmem:[%s3395_s0 + $0x254] sm:$0xf]  ;;  %v1868_v56 = vld [vmem:[%s3395_s0 + $0x258] sm:$0xf0] }
  0xc1   :  { %v1317_v2 = vmax.f32 %v1147_v63, 0.0  ;;  %804 = vmatmul.bf16.gmra.mxu0 %v1651_v53  ;;  %929 = vmatmul.bf16.gmra.mxu2 %v1851_v58  ;;  %v1025_v8 = vadd.f32 %v1024_v0, %v766_v4  ;;  %v1667_v58 = vor.u32 %v2057_v48, %v1666_v47  ;;  %v1867_v0 = vor.u32 %v2107_v50, %v1866_v49 }
  0xc2   :  { %1063 = vmatmul.bf16.gmra.mxu1 %v1655_v60  ;;  %1188 = vmatmul.bf16.gmra.mxu3 %v1855_v62 }
  0xc3   :  { %v2281_v3 = vpack.c.bf16 %v1317_v2, %v1316_v1  ;;  %v1268_v19 = vmax.f32 %v1025_v8, 0.0  ;;  %v1671_v2 = vor.u32 %v2056_v51, %v1668_v52  ;;  %v1682_v52 = vld [vmem:[%s3395_s0 + $0xe0] sm:$0xf] }
  0xc4   :  { %v890_v5 = vpop.f32.mrf.mxu2 }
  0xc5   :  { %2423 = vst [vmem:[%s3396_s3 + $0xd0] sm:$0xff] %v2281_v3   ;;  %v1149_v6 = vpop.f32.mrf.mxu3  ;;  %v891_v11 = vadd.f32 %v2752_v61, %v890_v5  ;;  %v1871_v3 = vor.u32 %v2106_v55, %v1868_v56  ;;  %v2111_v55 = vld [vmem:[%s3395_s0 + $0x274] sm:$0xf0]  ;;  %v2060_v56 = vld [vmem:[%s3395_s0 + $0xe4] sm:$0xf] }
  0xc6   :  { %v767_v7 = vpop.f32.mrf.mxu0 }
  0xc7   :  { %v768_v9 = vadd.f32 %v2752_v61, %v767_v7  ;;  %v1026_v10 = vpop.f32.mrf.mxu1  ;;  %v1150_v25 = vadd.f32 %v1149_v6, %v891_v11 }
  0xc9   :  { %v1027_v12 = vadd.f32 %v1026_v10, %v768_v9  ;;  %v1318_v35 = vmax.f32 %v1150_v25, 0.0 }
  0xcb   :  { %v1269_v20 = vmax.f32 %v1027_v12, 0.0 }
  0xcc   :  { %v892_v23 = vpop.f32.mrf.mxu2 }
  0xcd   :  { %v2161_v26 = vpack.c.bf16 %v1269_v20, %v1268_v19  ;;  %v893_v27 = vadd.f32 %v2752_v61, %v892_v23  ;;  %v1151_v28 = vpop.f32.mrf.mxu3  ;;  %v2059_v19 = vld [vmem:[%s3395_s0 + $0xd4] sm:$0xf0]  ;;  %v1874_v20 = vld [vmem:[%s3395_s0 + $0x260] sm:$0xf]  ;;  %v1676_v23 = vld [vmem:[%s3395_s0 + $0xd8] sm:$0xf0] }
  0xce   :  { %v770_v30 = vpop.f32.mrf.mxu0 }
  0xcf   :  { %2399 = vst [vmem:[%s3396_s3 + $0x10] sm:$0xff] %v2161_v26   ;;  %v1152_v33 = vadd.f32 %v1151_v28, %v893_v27  ;;  %v1029_v34 = vpop.f32.mrf.mxu1  ;;  %v771_v38 = vadd.f32 %v2752_v61, %v770_v30  ;;  %v2108_v26 = vld [vmem:[%s3395_s0 + $0x264] sm:$0xf]  ;;  %v1876_v27 = vld [vmem:[%s3395_s0 + $0x268] sm:$0xf0] }
  0xd1   :  { %v1319_v36 = vmax.f32 %v1152_v33, 0.0  ;;  %809 = vmatmul.bf16.gmra.mxu0 %v1659_v24  ;;  %934 = vmatmul.bf16.gmra.mxu2 %v1859_v29  ;;  %v1030_v42 = vadd.f32 %v1029_v34, %v771_v38  ;;  %v1675_v29 = vor.u32 %v2059_v19, %v1674_v18  ;;  %v1875_v34 = vor.u32 %v2109_v21, %v1874_v20 }
  0xd2   :  { %1068 = vmatmul.bf16.gmra.mxu1 %v1663_v31  ;;  %1193 = vmatmul.bf16.gmra.mxu3 %v1863_v32 }
  0xd3   :  { %v2286_v37 = vpack.c.bf16 %v1319_v36, %v1318_v35  ;;  %v1270_v53 = vmax.f32 %v1030_v42, 0.0  ;;  %v1679_v36 = vor.u32 %v2058_v22, %v1676_v23  ;;  %v1690_v23 = vld [vmem:[%s3395_s0 + $0xf0] sm:$0xf] }
  0xd4   :  { %v895_v39 = vpop.f32.mrf.mxu2 }
  0xd5   :  { %2424 = vst [vmem:[%s3396_s3 + $0xd8] sm:$0xff] %v2286_v37   ;;  %v1154_v40 = vpop.f32.mrf.mxu3  ;;  %v896_v45 = vadd.f32 %v2752_v61, %v895_v39  ;;  %v1879_v37 = vor.u32 %v2108_v26, %v1876_v27  ;;  %v2113_v26 = vld [vmem:[%s3395_s0 + $0x284] sm:$0xf0]  ;;  %v2062_v27 = vld [vmem:[%s3395_s0 + $0xf4] sm:$0xf] }
  0xd6   :  { %v772_v41 = vpop.f32.mrf.mxu0 }
  0xd7   :  { %v773_v43 = vadd.f32 %v2752_v61, %v772_v41  ;;  %v1031_v44 = vpop.f32.mrf.mxu1  ;;  %v1155_v59 = vadd.f32 %v1154_v40, %v896_v45 }
  0xd9   :  { %v1032_v46 = vadd.f32 %v1031_v44, %v773_v43  ;;  %v1320_v6 = vmax.f32 %v1155_v59, 0.0 }
  0xdb   :  { %v1271_v54 = vmax.f32 %v1032_v46, 0.0 }
  0xdc   :  { %v897_v57 = vpop.f32.mrf.mxu2 }
  0xdd   :  { %v2166_v60 = vpack.c.bf16 %v1271_v54, %v1270_v53  ;;  %v898_v62 = vadd.f32 %v2752_v61, %v897_v57  ;;  %v1156_v63 = vpop.f32.mrf.mxu3  ;;  %v2061_v53 = vld [vmem:[%s3395_s0 + $0xe4] sm:$0xf0]  ;;  %v1882_v54 = vld [vmem:[%s3395_s0 + $0x270] sm:$0xf]  ;;  %v1684_v57 = vld [vmem:[%s3395_s0 + $0xe8] sm:$0xf0] }
  0xde   :  { %v775_v1 = vpop.f32.mrf.mxu0 }
  0xdf   :  { %2400 = vst [vmem:[%s3396_s3 + $0x18] sm:$0xff] %v2166_v60   ;;  %v1157_v4 = vadd.f32 %v1156_v63, %v898_v62  ;;  %v1034_v5 = vpop.f32.mrf.mxu1  ;;  %v776_v9 = vadd.f32 %v2752_v61, %v775_v1  ;;  %v2110_v60 = vld [vmem:[%s3395_s0 + $0x274] sm:$0xf]  ;;  %v1884_v62 = vld [vmem:[%s3395_s0 + $0x278] sm:$0xf0] }
  0xe1   :  { %v1321_v7 = vmax.f32 %v1157_v4, 0.0  ;;  %814 = vmatmul.bf16.gmra.mxu0 %v1667_v58  ;;  %939 = vmatmul.bf16.gmra.mxu2 %v1867_v0  ;;  %v1035_v13 = vadd.f32 %v1034_v5, %v776_v9  ;;  %v1683_v0 = vor.u32 %v2061_v53, %v1682_v52  ;;  %v1883_v5 = vor.u32 %v2111_v55, %v1882_v54 }
  0xe2   :  { %1073 = vmatmul.bf16.gmra.mxu1 %v1671_v2  ;;  %1198 = vmatmul.bf16.gmra.mxu3 %v1871_v3 }
  0xe3   :  { %v2291_v8 = vpack.c.bf16 %v1321_v7, %v1320_v6  ;;  %v1272_v24 = vmax.f32 %v1035_v13, 0.0  ;;  %v1687_v7 = vor.u32 %v2060_v56, %v1684_v57  ;;  %v1698_v57 = vld [vmem:[%s3395_s0 + $0x100] sm:$0xf] }
  0xe4   :  { %v900_v10 = vpop.f32.mrf.mxu2 }
  0xe5   :  { %2425 = vst [vmem:[%s3396_s3 + $0xe0] sm:$0xff] %v2291_v8   ;;  %v1159_v11 = vpop.f32.mrf.mxu3  ;;  %v901_v16 = vadd.f32 %v2752_v61, %v900_v10  ;;  %v1887_v8 = vor.u32 %v2110_v60, %v1884_v62  ;;  %v2115_v60 = vld [vmem:[%s3395_s0 + $0x294] sm:$0xf0]  ;;  %v2064_v62 = vld [vmem:[%s3395_s0 + $0x104] sm:$0xf] }
  0xe6   :  { %v777_v12 = vpop.f32.mrf.mxu0 }
  0xe7   :  { %v778_v14 = vadd.f32 %v2752_v61, %v777_v12  ;;  %v1036_v15 = vpop.f32.mrf.mxu1  ;;  %v1160_v30 = vadd.f32 %v1159_v11, %v901_v16 }
  0xe9   :  { %v1037_v17 = vadd.f32 %v1036_v15, %v778_v14  ;;  %v1322_v40 = vmax.f32 %v1160_v30, 0.0 }
  0xeb   :  { %v1273_v25 = vmax.f32 %v1037_v17, 0.0 }
  0xec   :  { %v902_v28 = vpop.f32.mrf.mxu2 }
  0xed   :  { %v2171_v31 = vpack.c.bf16 %v1273_v25, %v1272_v24  ;;  %v903_v32 = vadd.f32 %v2752_v61, %v902_v28  ;;  %v1161_v33 = vpop.f32.mrf.mxu3  ;;  %v2063_v24 = vld [vmem:[%s3395_s0 + $0xf4] sm:$0xf0]  ;;  %v1890_v25 = vld [vmem:[%s3395_s0 + $0x280] sm:$0xf]  ;;  %v1692_v28 = vld [vmem:[%s3395_s0 + $0xf8] sm:$0xf0] }
  0xee   :  { %v780_v35 = vpop.f32.mrf.mxu0 }
  0xef   :  { %2401 = vst [vmem:[%s3396_s3 + $0x20] sm:$0xff] %v2171_v31   ;;  %v1162_v38 = vadd.f32 %v1161_v33, %v903_v32  ;;  %v1039_v39 = vpop.f32.mrf.mxu1  ;;  %v781_v43 = vadd.f32 %v2752_v61, %v780_v35  ;;  %v2112_v31 = vld [vmem:[%s3395_s0 + $0x284] sm:$0xf]  ;;  %v1892_v32 = vld [vmem:[%s3395_s0 + $0x288] sm:$0xf0] }
  0xf1   :  { %v1323_v41 = vmax.f32 %v1162_v38, 0.0  ;;  %819 = vmatmul.bf16.gmra.mxu0 %v1675_v29  ;;  %944 = vmatmul.bf16.gmra.mxu2 %v1875_v34  ;;  %v1040_v47 = vadd.f32 %v1039_v39, %v781_v43  ;;  %v1691_v34 = vor.u32 %v2063_v24, %v1690_v23  ;;  %v1891_v39 = vor.u32 %v2113_v26, %v1890_v25 }
  0xf2   :  { %1078 = vmatmul.bf16.gmra.mxu1 %v1679_v36  ;;  %1203 = vmatmul.bf16.gmra.mxu3 %v1879_v37 }
  0xf3   :  { %v2296_v42 = vpack.c.bf16 %v1323_v41, %v1322_v40  ;;  %v1274_v58 = vmax.f32 %v1040_v47, 0.0  ;;  %v1695_v41 = vor.u32 %v2062_v27, %v1692_v28  ;;  %v1706_v28 = vld [vmem:[%s3395_s0 + $0x110] sm:$0xf] }
  0xf4   :  { %v905_v44 = vpop.f32.mrf.mxu2 }
  0xf5   :  { %2426 = vst [vmem:[%s3396_s3 + $0xe8] sm:$0xff] %v2296_v42   ;;  %v1164_v45 = vpop.f32.mrf.mxu3  ;;  %v906_v50 = vadd.f32 %v2752_v61, %v905_v44  ;;  %v1895_v42 = vor.u32 %v2112_v31, %v1892_v32  ;;  %v2117_v31 = vld [vmem:[%s3395_s0 + $0x2a4] sm:$0xf0]  ;;  %v2066_v32 = vld [vmem:[%s3395_s0 + $0x114] sm:$0xf] }
  0xf6   :  { %v782_v46 = vpop.f32.mrf.mxu0 }
  0xf7   :  { %v783_v48 = vadd.f32 %v2752_v61, %v782_v46  ;;  %v1041_v49 = vpop.f32.mrf.mxu1  ;;  %v1165_v1 = vadd.f32 %v1164_v45, %v906_v50 }
  0xf9   :  { %v1042_v51 = vadd.f32 %v1041_v49, %v783_v48  ;;  %v1324_v11 = vmax.f32 %v1165_v1, 0.0 }
  0xfb   :  { %v1275_v59 = vmax.f32 %v1042_v51, 0.0 }
  0xfc   :  { %v907_v63 = vpop.f32.mrf.mxu2 }
  0xfd   :  { %v2176_v2 = vpack.c.bf16 %v1275_v59, %v1274_v58  ;;  %v908_v3 = vadd.f32 %v2752_v61, %v907_v63  ;;  %v1166_v4 = vpop.f32.mrf.mxu3  ;;  %v2065_v58 = vld [vmem:[%s3395_s0 + $0x104] sm:$0xf0]  ;;  %v1898_v59 = vld [vmem:[%s3395_s0 + $0x290] sm:$0xf]  ;;  %v1700_v63 = vld [vmem:[%s3395_s0 + $0x108] sm:$0xf0] }
  0xfe   :  { %v785_v6 = vpop.f32.mrf.mxu0 }
  0xff   :  { %2402 = vst [vmem:[%s3396_s3 + $0x28] sm:$0xff] %v2176_v2   ;;  %v1167_v9 = vadd.f32 %v1166_v4, %v908_v3  ;;  %v1044_v10 = vpop.f32.mrf.mxu1  ;;  %v786_v14 = vadd.f32 %v2752_v61, %v785_v6  ;;  %v2114_v2 = vld [vmem:[%s3395_s0 + $0x294] sm:$0xf]  ;;  %v1900_v3 = vld [vmem:[%s3395_s0 + $0x298] sm:$0xf0] }
 0x101   :  { %v1325_v12 = vmax.f32 %v1167_v9, 0.0  ;;  %824 = vmatmul.bf16.gmra.mxu0 %v1683_v0  ;;  %949 = vmatmul.bf16.gmra.mxu2 %v1883_v5  ;;  %v1045_v18 = vadd.f32 %v1044_v10, %v786_v14  ;;  %v1699_v5 = vor.u32 %v2065_v58, %v1698_v57  ;;  %v1899_v10 = vor.u32 %v2115_v60, %v1898_v59 }
 0x102   :  { %1083 = vmatmul.bf16.gmra.mxu1 %v1687_v7  ;;  %1208 = vmatmul.bf16.gmra.mxu3 %v1887_v8 }
 0x103   :  { %v2301_v13 = vpack.c.bf16 %v1325_v12, %v1324_v11  ;;  %v1276_v29 = vmax.f32 %v1045_v18, 0.0  ;;  %v1703_v12 = vor.u32 %v2064_v62, %v1700_v63  ;;  %v1714_v63 = vld [vmem:[%s3395_s0 + $0x120] sm:$0xf] }
 0x104   :  { %v910_v15 = vpop.f32.mrf.mxu2 }
 0x105   :  { %2427 = vst [vmem:[%s3396_s3 + $0xf0] sm:$0xff] %v2301_v13   ;;  %v1169_v16 = vpop.f32.mrf.mxu3  ;;  %v911_v21 = vadd.f32 %v2752_v61, %v910_v15  ;;  %v1903_v13 = vor.u32 %v2114_v2, %v1900_v3  ;;  %v2119_v2 = vld [vmem:[%s3395_s0 + $0x2b4] sm:$0xf0]  ;;  %v2068_v3 = vld [vmem:[%s3395_s0 + $0x124] sm:$0xf] }
 0x106   :  { %v787_v17 = vpop.f32.mrf.mxu0 }
 0x107   :  { %v788_v19 = vadd.f32 %v2752_v61, %v787_v17  ;;  %v1046_v20 = vpop.f32.mrf.mxu1  ;;  %v1170_v35 = vadd.f32 %v1169_v16, %v911_v21 }
 0x109   :  { %v1047_v22 = vadd.f32 %v1046_v20, %v788_v19  ;;  %v1326_v45 = vmax.f32 %v1170_v35, 0.0 }
 0x10b   :  { %v1277_v30 = vmax.f32 %v1047_v22, 0.0 }
 0x10c   :  { %v912_v33 = vpop.f32.mrf.mxu2 }
 0x10d   :  { %v2181_v36 = vpack.c.bf16 %v1277_v30, %v1276_v29  ;;  %v913_v37 = vadd.f32 %v2752_v61, %v912_v33  ;;  %v1171_v38 = vpop.f32.mrf.mxu3  ;;  %v2067_v29 = vld [vmem:[%s3395_s0 + $0x114] sm:$0xf0]  ;;  %v1906_v30 = vld [vmem:[%s3395_s0 + $0x2a0] sm:$0xf]  ;;  %v1708_v33 = vld [vmem:[%s3395_s0 + $0x118] sm:$0xf0] }
 0x10e   :  { %v790_v40 = vpop.f32.mrf.mxu0 }
 0x10f   :  { %2403 = vst [vmem:[%s3396_s3 + $0x30] sm:$0xff] %v2181_v36   ;;  %v1172_v43 = vadd.f32 %v1171_v38, %v913_v37  ;;  %v1049_v44 = vpop.f32.mrf.mxu1  ;;  %v791_v48 = vadd.f32 %v2752_v61, %v790_v40  ;;  %v2116_v36 = vld [vmem:[%s3395_s0 + $0x2a4] sm:$0xf]  ;;  %v1908_v37 = vld [vmem:[%s3395_s0 + $0x2a8] sm:$0xf0] }
 0x111   :  { %v1327_v46 = vmax.f32 %v1172_v43, 0.0  ;;  %829 = vmatmul.bf16.gmra.mxu0 %v1691_v34  ;;  %954 = vmatmul.bf16.gmra.mxu2 %v1891_v39  ;;  %v1050_v52 = vadd.f32 %v1049_v44, %v791_v48  ;;  %v1707_v39 = vor.u32 %v2067_v29, %v1706_v28  ;;  %v1907_v44 = vor.u32 %v2117_v31, %v1906_v30 }
 0x112   :  { %1088 = vmatmul.bf16.gmra.mxu1 %v1695_v41  ;;  %1213 = vmatmul.bf16.gmra.mxu3 %v1895_v42 }
 0x113   :  { %v2306_v47 = vpack.c.bf16 %v1327_v46, %v1326_v45  ;;  %v1278_v0 = vmax.f32 %v1050_v52, 0.0  ;;  %v1711_v46 = vor.u32 %v2066_v32, %v1708_v33  ;;  %v1722_v33 = vld [vmem:[%s3395_s0 + $0x130] sm:$0xf] }
 0x114   :  { %v915_v49 = vpop.f32.mrf.mxu2 }
 0x115   :  { %2428 = vst [vmem:[%s3396_s3 + $0xf8] sm:$0xff] %v2306_v47   ;;  %v1174_v50 = vpop.f32.mrf.mxu3  ;;  %v916_v55 = vadd.f32 %v2752_v61, %v915_v49  ;;  %v1911_v47 = vor.u32 %v2116_v36, %v1908_v37  ;;  %v2121_v36 = vld [vmem:[%s3395_s0 + $0x2c4] sm:$0xf0]  ;;  %v2070_v37 = vld [vmem:[%s3395_s0 + $0x134] sm:$0xf] }
 0x116   :  { %v792_v51 = vpop.f32.mrf.mxu0 }
 0x117   :  { %v793_v53 = vadd.f32 %v2752_v61, %v792_v51  ;;  %v1051_v54 = vpop.f32.mrf.mxu1  ;;  %v1175_v6 = vadd.f32 %v1174_v50, %v916_v55 }
 0x119   :  { %v1052_v56 = vadd.f32 %v1051_v54, %v793_v53  ;;  %v1328_v16 = vmax.f32 %v1175_v6, 0.0 }
 0x11b   :  { %v1279_v1 = vmax.f32 %v1052_v56, 0.0 }
 0x11c   :  { %v917_v4 = vpop.f32.mrf.mxu2 }
 0x11d   :  { %v2186_v7 = vpack.c.bf16 %v1279_v1, %v1278_v0  ;;  %v918_v8 = vadd.f32 %v2752_v61, %v917_v4  ;;  %v1176_v9 = vpop.f32.mrf.mxu3  ;;  %v2069_v0 = vld [vmem:[%s3395_s0 + $0x124] sm:$0xf0]  ;;  %v1914_v1 = vld [vmem:[%s3395_s0 + $0x2b0] sm:$0xf]  ;;  %v1716_v4 = vld [vmem:[%s3395_s0 + $0x128] sm:$0xf0] }
 0x11e   :  { %v795_v11 = vpop.f32.mrf.mxu0 }
 0x11f   :  { %2404 = vst [vmem:[%s3396_s3 + $0x38] sm:$0xff] %v2186_v7   ;;  %v1177_v14 = vadd.f32 %v1176_v9, %v918_v8  ;;  %v1054_v15 = vpop.f32.mrf.mxu1  ;;  %v796_v19 = vadd.f32 %v2752_v61, %v795_v11  ;;  %v2118_v7 = vld [vmem:[%s3395_s0 + $0x2b4] sm:$0xf]  ;;  %v1916_v8 = vld [vmem:[%s3395_s0 + $0x2b8] sm:$0xf0] }
 0x121   :  { %v1329_v17 = vmax.f32 %v1177_v14, 0.0  ;;  %834 = vmatmul.bf16.gmra.mxu0 %v1699_v5  ;;  %959 = vmatmul.bf16.gmra.mxu2 %v1899_v10  ;;  %v1055_v23 = vadd.f32 %v1054_v15, %v796_v19  ;;  %v1715_v10 = vor.u32 %v2069_v0, %v1714_v63  ;;  %v1915_v15 = vor.u32 %v2119_v2, %v1914_v1 }
 0x122   :  { %1093 = vmatmul.bf16.gmra.mxu1 %v1703_v12  ;;  %1218 = vmatmul.bf16.gmra.mxu3 %v1903_v13 }
 0x123   :  { %v2311_v18 = vpack.c.bf16 %v1329_v17, %v1328_v16  ;;  %v1280_v34 = vmax.f32 %v1055_v23, 0.0  ;;  %v1719_v17 = vor.u32 %v2068_v3, %v1716_v4  ;;  %v1730_v4 = vld [vmem:[%s3395_s0 + $0x140] sm:$0xf] }
 0x124   :  { %v920_v20 = vpop.f32.mrf.mxu2 }
 0x125   :  { %2429 = vst [vmem:[%s3396_s3 + $0x100] sm:$0xff] %v2311_v18   ;;  %v1179_v21 = vpop.f32.mrf.mxu3  ;;  %v921_v26 = vadd.f32 %v2752_v61, %v920_v20  ;;  %v1919_v18 = vor.u32 %v2118_v7, %v1916_v8  ;;  %v2123_v7 = vld [vmem:[%s3395_s0 + $0x2d4] sm:$0xf0]  ;;  %v2072_v8 = vld [vmem:[%s3395_s0 + $0x144] sm:$0xf] }
 0x126   :  { %v797_v22 = vpop.f32.mrf.mxu0 }
 0x127   :  { %v798_v24 = vadd.f32 %v2752_v61, %v797_v22  ;;  %v1056_v25 = vpop.f32.mrf.mxu1  ;;  %v1180_v40 = vadd.f32 %v1179_v21, %v921_v26 }
 0x129   :  { %v1057_v27 = vadd.f32 %v1056_v25, %v798_v24  ;;  %v1330_v50 = vmax.f32 %v1180_v40, 0.0 }
 0x12b   :  { %v1281_v35 = vmax.f32 %v1057_v27, 0.0 }
 0x12c   :  { %v922_v38 = vpop.f32.mrf.mxu2 }
 0x12d   :  { %v2191_v41 = vpack.c.bf16 %v1281_v35, %v1280_v34  ;;  %v923_v42 = vadd.f32 %v2752_v61, %v922_v38  ;;  %v1181_v43 = vpop.f32.mrf.mxu3  ;;  %v2071_v34 = vld [vmem:[%s3395_s0 + $0x134] sm:$0xf0]  ;;  %v1922_v35 = vld [vmem:[%s3395_s0 + $0x2c0] sm:$0xf]  ;;  %v1724_v38 = vld [vmem:[%s3395_s0 + $0x138] sm:$0xf0] }
 0x12e   :  { %v800_v45 = vpop.f32.mrf.mxu0 }
 0x12f   :  { %2405 = vst [vmem:[%s3396_s3 + $0x40] sm:$0xff] %v2191_v41   ;;  %v1182_v48 = vadd.f32 %v1181_v43, %v923_v42  ;;  %v1059_v49 = vpop.f32.mrf.mxu1  ;;  %v801_v53 = vadd.f32 %v2752_v61, %v800_v45  ;;  %v2120_v41 = vld [vmem:[%s3395_s0 + $0x2c4] sm:$0xf]  ;;  %v1924_v42 = vld [vmem:[%s3395_s0 + $0x2c8] sm:$0xf0] }
 0x131   :  { %v1331_v51 = vmax.f32 %v1182_v48, 0.0  ;;  %839 = vmatmul.bf16.gmra.mxu0 %v1707_v39  ;;  %964 = vmatmul.bf16.gmra.mxu2 %v1907_v44  ;;  %v1060_v57 = vadd.f32 %v1059_v49, %v801_v53  ;;  %v1723_v44 = vor.u32 %v2071_v34, %v1722_v33  ;;  %v1923_v49 = vor.u32 %v2121_v36, %v1922_v35 }
 0x132   :  { %1098 = vmatmul.bf16.gmra.mxu1 %v1711_v46  ;;  %1223 = vmatmul.bf16.gmra.mxu3 %v1911_v47 }
 0x133   :  { %v2316_v52 = vpack.c.bf16 %v1331_v51, %v1330_v50  ;;  %v1282_v5 = vmax.f32 %v1060_v57, 0.0  ;;  %v1727_v51 = vor.u32 %v2070_v37, %v1724_v38  ;;  %v1738_v38 = vld [vmem:[%s3395_s0 + $0x150] sm:$0xf] }
 0x134   :  { %v925_v54 = vpop.f32.mrf.mxu2 }
 0x135   :  { %2430 = vst [vmem:[%s3396_s3 + $0x108] sm:$0xff] %v2316_v52   ;;  %v1184_v55 = vpop.f32.mrf.mxu3  ;;  %v926_v60 = vadd.f32 %v2752_v61, %v925_v54  ;;  %v1927_v52 = vor.u32 %v2120_v41, %v1924_v42  ;;  %v2125_v41 = vld [vmem:[%s3395_s0 + $0x2e4] sm:$0xf0]  ;;  %v2074_v42 = vld [vmem:[%s3395_s0 + $0x154] sm:$0xf] }
 0x136   :  { %v802_v56 = vpop.f32.mrf.mxu0 }
 0x137   :  { %v803_v58 = vadd.f32 %v2752_v61, %v802_v56  ;;  %v1061_v59 = vpop.f32.mrf.mxu1  ;;  %v1185_v11 = vadd.f32 %v1184_v55, %v926_v60 }
 0x139   :  { %v1062_v62 = vadd.f32 %v1061_v59, %v803_v58  ;;  %v1332_v21 = vmax.f32 %v1185_v11, 0.0 }
 0x13b   :  { %v1283_v6 = vmax.f32 %v1062_v62, 0.0 }
 0x13c   :  { %v927_v9 = vpop.f32.mrf.mxu2 }
 0x13d   :  { %v2196_v12 = vpack.c.bf16 %v1283_v6, %v1282_v5  ;;  %v928_v13 = vadd.f32 %v2752_v61, %v927_v9  ;;  %v1186_v14 = vpop.f32.mrf.mxu3  ;;  %v2073_v5 = vld [vmem:[%s3395_s0 + $0x144] sm:$0xf0]  ;;  %v1930_v6 = vld [vmem:[%s3395_s0 + $0x2d0] sm:$0xf]  ;;  %v1732_v9 = vld [vmem:[%s3395_s0 + $0x148] sm:$0xf0] }
 0x13e   :  { %v805_v16 = vpop.f32.mrf.mxu0 }
 0x13f   :  { %2406 = vst [vmem:[%s3396_s3 + $0x48] sm:$0xff] %v2196_v12   ;;  %v1187_v19 = vadd.f32 %v1186_v14, %v928_v13  ;;  %v1064_v20 = vpop.f32.mrf.mxu1  ;;  %v806_v24 = vadd.f32 %v2752_v61, %v805_v16  ;;  %v2122_v12 = vld [vmem:[%s3395_s0 + $0x2d4] sm:$0xf]  ;;  %v1932_v13 = vld [vmem:[%s3395_s0 + $0x2d8] sm:$0xf0] }
 0x141   :  { %v1333_v22 = vmax.f32 %v1187_v19, 0.0  ;;  %844 = vmatmul.bf16.gmra.mxu0 %v1715_v10  ;;  %969 = vmatmul.bf16.gmra.mxu2 %v1915_v15  ;;  %v1065_v28 = vadd.f32 %v1064_v20, %v806_v24  ;;  %v1731_v15 = vor.u32 %v2073_v5, %v1730_v4  ;;  %v1931_v20 = vor.u32 %v2123_v7, %v1930_v6 }
 0x142   :  { %1103 = vmatmul.bf16.gmra.mxu1 %v1719_v17  ;;  %1228 = vmatmul.bf16.gmra.mxu3 %v1919_v18 }
 0x143   :  { %v2321_v23 = vpack.c.bf16 %v1333_v22, %v1332_v21  ;;  %v1284_v39 = vmax.f32 %v1065_v28, 0.0  ;;  %v1735_v22 = vor.u32 %v2072_v8, %v1732_v9  ;;  %v1746_v9 = vld [vmem:[%s3395_s0 + $0x160] sm:$0xf] }
 0x144   :  { %v930_v25 = vpop.f32.mrf.mxu2 }
 0x145   :  { %2431 = vst [vmem:[%s3396_s3 + $0x110] sm:$0xff] %v2321_v23   ;;  %v1189_v26 = vpop.f32.mrf.mxu3  ;;  %v931_v31 = vadd.f32 %v2752_v61, %v930_v25  ;;  %v1935_v23 = vor.u32 %v2122_v12, %v1932_v13  ;;  %v2127_v12 = vld [vmem:[%s3395_s0 + $0x2f4] sm:$0xf0]  ;;  %v2076_v13 = vld [vmem:[%s3395_s0 + $0x164] sm:$0xf] }
 0x146   :  { %v807_v27 = vpop.f32.mrf.mxu0 }
 0x147   :  { %v808_v29 = vadd.f32 %v2752_v61, %v807_v27  ;;  %v1066_v30 = vpop.f32.mrf.mxu1  ;;  %v1190_v45 = vadd.f32 %v1189_v26, %v931_v31 }
 0x149   :  { %v1067_v32 = vadd.f32 %v1066_v30, %v808_v29  ;;  %v1334_v55 = vmax.f32 %v1190_v45, 0.0 }
 0x14b   :  { %v1285_v40 = vmax.f32 %v1067_v32, 0.0 }
 0x14c   :  { %v932_v43 = vpop.f32.mrf.mxu2 }
 0x14d   :  { %v2201_v46 = vpack.c.bf16 %v1285_v40, %v1284_v39  ;;  %v933_v47 = vadd.f32 %v2752_v61, %v932_v43  ;;  %v1191_v48 = vpop.f32.mrf.mxu3  ;;  %v2075_v39 = vld [vmem:[%s3395_s0 + $0x154] sm:$0xf0]  ;;  %v1938_v40 = vld [vmem:[%s3395_s0 + $0x2e0] sm:$0xf]  ;;  %v1740_v43 = vld [vmem:[%s3395_s0 + $0x158] sm:$0xf0] }
 0x14e   :  { %v810_v50 = vpop.f32.mrf.mxu0 }
 0x14f   :  { %2407 = vst [vmem:[%s3396_s3 + $0x50] sm:$0xff] %v2201_v46   ;;  %v1192_v53 = vadd.f32 %v1191_v48, %v933_v47  ;;  %v1069_v54 = vpop.f32.mrf.mxu1  ;;  %v811_v58 = vadd.f32 %v2752_v61, %v810_v50  ;;  %v2124_v46 = vld [vmem:[%s3395_s0 + $0x2e4] sm:$0xf]  ;;  %v1940_v47 = vld [vmem:[%s3395_s0 + $0x2e8] sm:$0xf0] }
 0x151   :  { %v1335_v56 = vmax.f32 %v1192_v53, 0.0  ;;  %849 = vmatmul.bf16.gmra.mxu0 %v1723_v44  ;;  %974 = vmatmul.bf16.gmra.mxu2 %v1923_v49  ;;  %v1070_v63 = vadd.f32 %v1069_v54, %v811_v58  ;;  %v1739_v49 = vor.u32 %v2075_v39, %v1738_v38  ;;  %v1939_v54 = vor.u32 %v2125_v41, %v1938_v40 }
 0x152   :  { %1108 = vmatmul.bf16.gmra.mxu1 %v1727_v51  ;;  %1233 = vmatmul.bf16.gmra.mxu3 %v1927_v52 }
 0x153   :  { %v2326_v57 = vpack.c.bf16 %v1335_v56, %v1334_v55  ;;  %v1286_v10 = vmax.f32 %v1070_v63, 0.0  ;;  %v1743_v56 = vor.u32 %v2074_v42, %v1740_v43  ;;  %v1754_v43 = vld [vmem:[%s3395_s0 + $0x170] sm:$0xf] }
 0x154   :  { %v935_v59 = vpop.f32.mrf.mxu2 }
 0x155   :  { %2432 = vst [vmem:[%s3396_s3 + $0x118] sm:$0xff] %v2326_v57   ;;  %v1194_v60 = vpop.f32.mrf.mxu3  ;;  %v936_v2 = vadd.f32 %v2752_v61, %v935_v59  ;;  %v1943_v57 = vor.u32 %v2124_v46, %v1940_v47  ;;  %v2129_v46 = vld [vmem:[%s3395_s0 + $0x304] sm:$0xf0]  ;;  %v2078_v47 = vld [vmem:[%s3395_s0 + $0x174] sm:$0xf] }
 0x156   :  { %v812_v62 = vpop.f32.mrf.mxu0 }
 0x157   :  { %v813_v0 = vadd.f32 %v2752_v61, %v812_v62  ;;  %v1071_v1 = vpop.f32.mrf.mxu1  ;;  %v1195_v16 = vadd.f32 %v1194_v60, %v936_v2 }
 0x159   :  { %v1072_v3 = vadd.f32 %v1071_v1, %v813_v0  ;;  %v1336_v26 = vmax.f32 %v1195_v16, 0.0 }
 0x15b   :  { %v1287_v11 = vmax.f32 %v1072_v3, 0.0 }
 0x15c   :  { %v937_v14 = vpop.f32.mrf.mxu2 }
 0x15d   :  { %v2206_v17 = vpack.c.bf16 %v1287_v11, %v1286_v10  ;;  %v938_v18 = vadd.f32 %v2752_v61, %v937_v14  ;;  %v1196_v19 = vpop.f32.mrf.mxu3  ;;  %v2077_v10 = vld [vmem:[%s3395_s0 + $0x164] sm:$0xf0]  ;;  %v1946_v11 = vld [vmem:[%s3395_s0 + $0x2f0] sm:$0xf]  ;;  %v1748_v14 = vld [vmem:[%s3395_s0 + $0x168] sm:$0xf0] }
 0x15e   :  { %v815_v21 = vpop.f32.mrf.mxu0 }
 0x15f   :  { %2408 = vst [vmem:[%s3396_s3 + $0x58] sm:$0xff] %v2206_v17   ;;  %v1197_v24 = vadd.f32 %v1196_v19, %v938_v18  ;;  %v1074_v25 = vpop.f32.mrf.mxu1  ;;  %v816_v29 = vadd.f32 %v2752_v61, %v815_v21  ;;  %v2126_v17 = vld [vmem:[%s3395_s0 + $0x2f4] sm:$0xf]  ;;  %v1948_v18 = vld [vmem:[%s3395_s0 + $0x2f8] sm:$0xf0] }
 0x161   :  { %v1337_v27 = vmax.f32 %v1197_v24, 0.0  ;;  %854 = vmatmul.bf16.gmra.mxu0 %v1731_v15  ;;  %979 = vmatmul.bf16.gmra.mxu2 %v1931_v20  ;;  %v1075_v33 = vadd.f32 %v1074_v25, %v816_v29  ;;  %v1747_v20 = vor.u32 %v2077_v10, %v1746_v9  ;;  %v1947_v25 = vor.u32 %v2127_v12, %v1946_v11 }
 0x162   :  { %1113 = vmatmul.bf16.gmra.mxu1 %v1735_v22  ;;  %1238 = vmatmul.bf16.gmra.mxu3 %v1935_v23 }
 0x163   :  { %v2331_v28 = vpack.c.bf16 %v1337_v27, %v1336_v26  ;;  %v1288_v44 = vmax.f32 %v1075_v33, 0.0  ;;  %v1751_v27 = vor.u32 %v2076_v13, %v1748_v14  ;;  %v1762_v14 = vld [vmem:[%s3395_s0 + $0x180] sm:$0xf] }
 0x164   :  { %v940_v30 = vpop.f32.mrf.mxu2 }
 0x165   :  { %2433 = vst [vmem:[%s3396_s3 + $0x120] sm:$0xff] %v2331_v28   ;;  %v1199_v31 = vpop.f32.mrf.mxu3  ;;  %v941_v36 = vadd.f32 %v2752_v61, %v940_v30  ;;  %v1951_v28 = vor.u32 %v2126_v17, %v1948_v18  ;;  %v2131_v17 = vld [vmem:[%s3395_s0 + $0x314] sm:$0xf0]  ;;  %v2080_v18 = vld [vmem:[%s3395_s0 + $0x184] sm:$0xf] }
 0x166   :  { %v817_v32 = vpop.f32.mrf.mxu0 }
 0x167   :  { %v818_v34 = vadd.f32 %v2752_v61, %v817_v32  ;;  %v1076_v35 = vpop.f32.mrf.mxu1  ;;  %v1200_v50 = vadd.f32 %v1199_v31, %v941_v36 }
 0x169   :  { %v1077_v37 = vadd.f32 %v1076_v35, %v818_v34  ;;  %v1338_v60 = vmax.f32 %v1200_v50, 0.0 }
 0x16b   :  { %v1289_v45 = vmax.f32 %v1077_v37, 0.0 }
 0x16c   :  { %v942_v48 = vpop.f32.mrf.mxu2 }
 0x16d   :  { %v2211_v51 = vpack.c.bf16 %v1289_v45, %v1288_v44  ;;  %v943_v52 = vadd.f32 %v2752_v61, %v942_v48  ;;  %v1201_v53 = vpop.f32.mrf.mxu3  ;;  %v3196_v61 = vld [vmem:[%s3394_s2] ss:$0 sm:$0xff]  ;;  %v2079_v44 = vld [vmem:[%s3395_s0 + $0x174] sm:$0xf0]  ;;  %v1756_v48 = vld [vmem:[%s3395_s0 + $0x178] sm:$0xf0] }
 0x16e   :  { %v820_v55 = vpop.f32.mrf.mxu0  ;;  %v1954_v45 = vld [vmem:[%s3395_s0 + $0x300] sm:$0xf] }
 0x16f   :  { %2409 = vst [vmem:[%s3396_s3 + $0x60] sm:$0xff] %v2211_v51   ;;  %v1202_v58 = vadd.f32 %v1201_v53, %v943_v52  ;;  %v1079_v59 = vpop.f32.mrf.mxu1  ;;  %v821_v0 = vadd.f32 %v3196_v61, %v820_v55  ;;  %v2128_v51 = vld [vmem:[%s3395_s0 + $0x304] sm:$0xf]  ;;  %v1956_v52 = vld [vmem:[%s3395_s0 + $0x308] sm:$0xf0] }
 0x171   :  { %v1339_v62 = vmax.f32 %v1202_v58, 0.0  ;;  %859 = vmatmul.bf16.gmra.mxu0 %v1739_v49  ;;  %984 = vmatmul.bf16.gmra.mxu2 %v1939_v54  ;;  %v1080_v4 = vadd.f32 %v1079_v59, %v821_v0  ;;  %v1755_v54 = vor.u32 %v2079_v44, %v1754_v43  ;;  %v1955_v59 = vor.u32 %v2129_v46, %v1954_v45 }
 0x172   :  { %1118 = vmatmul.bf16.gmra.mxu1 %v1743_v56  ;;  %1243 = vmatmul.bf16.gmra.mxu3 %v1943_v57 }
 0x173   :  { %v2336_v63 = vpack.c.bf16 %v1339_v62, %v1338_v60  ;;  %v1290_v15 = vmax.f32 %v1080_v4, 0.0  ;;  %v1759_v62 = vor.u32 %v2078_v47, %v1756_v48 }
 0x174   :  { %v945_v1 = vpop.f32.mrf.mxu2 }
 0x175   :  { %2434 = vst [vmem:[%s3396_s3 + $0x128] sm:$0xff] %v2336_v63   ;;  %v1204_v2 = vpop.f32.mrf.mxu3  ;;  %v946_v7 = vadd.f32 %v3196_v61, %v945_v1  ;;  %v1959_v63 = vor.u32 %v2128_v51, %v1956_v52 }
 0x176   :  { %v822_v3 = vpop.f32.mrf.mxu0 }
 0x177   :  { %v823_v5 = vadd.f32 %v3196_v61, %v822_v3  ;;  %v1081_v6 = vpop.f32.mrf.mxu1  ;;  %v1205_v21 = vadd.f32 %v1204_v2, %v946_v7 }
 0x179   :  { %v1082_v8 = vadd.f32 %v1081_v6, %v823_v5  ;;  %v1340_v31 = vmax.f32 %v1205_v21, 0.0 }
 0x17b   :  { %v1291_v16 = vmax.f32 %v1082_v8, 0.0 }
 0x17c   :  { %v947_v19 = vpop.f32.mrf.mxu2 }
 0x17d   :  { %v2216_v22 = vpack.c.bf16 %v1291_v16, %v1290_v15  ;;  %v948_v23 = vadd.f32 %v3196_v61, %v947_v19  ;;  %v1206_v24 = vpop.f32.mrf.mxu3  ;;  %v2081_v15 = vld [vmem:[%s3395_s0 + $0x184] sm:$0xf0]  ;;  %v1962_v16 = vld [vmem:[%s3395_s0 + $0x310] sm:$0xf]  ;;  %v1764_v19 = vld [vmem:[%s3395_s0 + $0x188] sm:$0xf0] }
 0x17e   :  { %v825_v26 = vpop.f32.mrf.mxu0 }
 0x17f   :  { %2410 = vst [vmem:[%s3396_s3 + $0x68] sm:$0xff] %v2216_v22   ;;  %v1207_v29 = vadd.f32 %v1206_v24, %v948_v23  ;;  %v1084_v30 = vpop.f32.mrf.mxu1  ;;  %v826_v34 = vadd.f32 %v3196_v61, %v825_v26  ;;  %v2130_v22 = vld [vmem:[%s3395_s0 + $0x314] sm:$0xf]  ;;  %v1964_v23 = vld [vmem:[%s3395_s0 + $0x318] sm:$0xf0] }
 0x181   :  { %v1341_v32 = vmax.f32 %v1207_v29, 0.0  ;;  %864 = vmatmul.bf16.gmra.mxu0 %v1747_v20  ;;  %989 = vmatmul.bf16.gmra.mxu2 %v1947_v25  ;;  %v1085_v38 = vadd.f32 %v1084_v30, %v826_v34  ;;  %v1763_v25 = vor.u32 %v2081_v15, %v1762_v14  ;;  %v1963_v30 = vor.u32 %v2131_v17, %v1962_v16 }
 0x182   :  { %1123 = vmatmul.bf16.gmra.mxu1 %v1751_v27  ;;  %1248 = vmatmul.bf16.gmra.mxu3 %v1951_v28 }
 0x183   :  { %v2341_v33 = vpack.c.bf16 %v1341_v32, %v1340_v31  ;;  %v1292_v49 = vmax.f32 %v1085_v38, 0.0  ;;  %v1767_v32 = vor.u32 %v2080_v18, %v1764_v19 }
 0x184   :  { %v950_v35 = vpop.f32.mrf.mxu2 }
 0x185   :  { %2435 = vst [vmem:[%s3396_s3 + $0x130] sm:$0xff] %v2341_v33   ;;  %v1209_v36 = vpop.f32.mrf.mxu3  ;;  %v951_v41 = vadd.f32 %v3196_v61, %v950_v35  ;;  %v1967_v33 = vor.u32 %v2130_v22, %v1964_v23 }
 0x186   :  { %v827_v37 = vpop.f32.mrf.mxu0 }
 0x187   :  { %v828_v39 = vadd.f32 %v3196_v61, %v827_v37  ;;  %v1086_v40 = vpop.f32.mrf.mxu1  ;;  %v1210_v55 = vadd.f32 %v1209_v36, %v951_v41 }
 0x189   :  { %v1087_v42 = vadd.f32 %v1086_v40, %v828_v39  ;;  %v1342_v2 = vmax.f32 %v1210_v55, 0.0 }
 0x18b   :  { %v1293_v50 = vmax.f32 %v1087_v42, 0.0 }
 0x18c   :  { %v952_v53 = vpop.f32.mrf.mxu2 }
 0x18d   :  { %v2221_v56 = vpack.c.bf16 %v1293_v50, %v1292_v49  ;;  %v953_v57 = vadd.f32 %v3196_v61, %v952_v53  ;;  %v1211_v58 = vpop.f32.mrf.mxu3 }
 0x18e   :  { %v830_v60 = vpop.f32.mrf.mxu0 }
 0x18f   :  { %2411 = vst [vmem:[%s3396_s3 + $0x70] sm:$0xff] %v2221_v56   ;;  %v1212_v0 = vadd.f32 %v1211_v58, %v953_v57  ;;  %v1089_v1 = vpop.f32.mrf.mxu1  ;;  %v831_v5 = vadd.f32 %v3196_v61, %v830_v60 }
 0x191   :  { %v1343_v3 = vmax.f32 %v1212_v0, 0.0  ;;  %869 = vmatmul.bf16.gmra.mxu0 %v1755_v54  ;;  %994 = vmatmul.bf16.gmra.mxu2 %v1955_v59  ;;  %v1090_v9 = vadd.f32 %v1089_v1, %v831_v5 }
 0x192   :  { %1128 = vmatmul.bf16.gmra.mxu1 %v1759_v62  ;;  %1253 = vmatmul.bf16.gmra.mxu3 %v1959_v63 }
 0x193   :  { %v2346_v4 = vpack.c.bf16 %v1343_v3, %v1342_v2  ;;  %v1294_v20 = vmax.f32 %v1090_v9, 0.0 }
 0x194   :  { %v955_v6 = vpop.f32.mrf.mxu2 }
 0x195   :  { %2436 = vst [vmem:[%s3396_s3 + $0x138] sm:$0xff] %v2346_v4   ;;  %v1214_v7 = vpop.f32.mrf.mxu3  ;;  %v956_v12 = vadd.f32 %v3196_v61, %v955_v6 }
 0x196   :  { %v832_v8 = vpop.f32.mrf.mxu0 }
 0x197   :  { %v833_v10 = vadd.f32 %v3196_v61, %v832_v8  ;;  %v1091_v11 = vpop.f32.mrf.mxu1  ;;  %v1215_v26 = vadd.f32 %v1214_v7, %v956_v12 }
 0x199   :  { %v1092_v13 = vadd.f32 %v1091_v11, %v833_v10  ;;  %v1344_v36 = vmax.f32 %v1215_v26, 0.0 }
 0x19b   :  { %v1295_v21 = vmax.f32 %v1092_v13, 0.0 }
 0x19c   :  { %v957_v24 = vpop.f32.mrf.mxu2 }
 0x19d   :  { %v2226_v27 = vpack.c.bf16 %v1295_v21, %v1294_v20  ;;  %v958_v28 = vadd.f32 %v3196_v61, %v957_v24  ;;  %v1216_v29 = vpop.f32.mrf.mxu3 }
 0x19e   :  { %v835_v31 = vpop.f32.mrf.mxu0 }
 0x19f   :  { %2412 = vst [vmem:[%s3396_s3 + $0x78] sm:$0xff] %v2226_v27   ;;  %v1217_v34 = vadd.f32 %v1216_v29, %v958_v28  ;;  %v1094_v35 = vpop.f32.mrf.mxu1  ;;  %v836_v39 = vadd.f32 %v3196_v61, %v835_v31 }
 0x1a1   :  { %v1345_v37 = vmax.f32 %v1217_v34, 0.0  ;;  %874 = vmatmul.bf16.gmra.mxu0 %v1763_v25  ;;  %999 = vmatmul.bf16.gmra.mxu2 %v1963_v30  ;;  %v1095_v43 = vadd.f32 %v1094_v35, %v836_v39 }
 0x1a2   :  { %1133 = vmatmul.bf16.gmra.mxu1 %v1767_v32  ;;  %1258 = vmatmul.bf16.gmra.mxu3 %v1967_v33 }
 0x1a3   :  { %v2351_v38 = vpack.c.bf16 %v1345_v37, %v1344_v36  ;;  %v1296_v48 = vmax.f32 %v1095_v43, 0.0 }
 0x1a4   :  { %v960_v40 = vpop.f32.mrf.mxu2 }
 0x1a5   :  { %2437 = vst [vmem:[%s3396_s3 + $0x140] sm:$0xff] %v2351_v38   ;;  %v1219_v41 = vpop.f32.mrf.mxu3  ;;  %v961_v46 = vadd.f32 %v3196_v61, %v960_v40 }
 0x1a6   :  { %v837_v42 = vpop.f32.mrf.mxu0 }
 0x1a7   :  { %v838_v44 = vadd.f32 %v3196_v61, %v837_v42  ;;  %v1096_v45 = vpop.f32.mrf.mxu1  ;;  %v1220_v51 = vadd.f32 %v1219_v41, %v961_v46 }
 0x1a9   :  { %v1097_v47 = vadd.f32 %v1096_v45, %v838_v44  ;;  %v1346_v58 = vmax.f32 %v1220_v51, 0.0 }
 0x1ab   :  { %v1297_v49 = vmax.f32 %v1097_v47, 0.0 }
 0x1ac   :  { %v962_v50 = vpop.f32.mrf.mxu2 }
 0x1ad   :  { %v2231_v52 = vpack.c.bf16 %v1297_v49, %v1296_v48  ;;  %v963_v53 = vadd.f32 %v3196_v61, %v962_v50  ;;  %v1221_v54 = vpop.f32.mrf.mxu3 }
 0x1ae   :  { %v840_v55 = vpop.f32.mrf.mxu0 }
 0x1af   :  { %2413 = vst [vmem:[%s3396_s3 + $0x80] sm:$0xff] %v2231_v52   ;;  %v1222_v56 = vadd.f32 %v1221_v54, %v963_v53  ;;  %v1099_v57 = vpop.f32.mrf.mxu1  ;;  %v841_v62 = vadd.f32 %v3196_v61, %v840_v55 }
 0x1b1   :  { %v1347_v59 = vmax.f32 %v1222_v56, 0.0  ;;  %v1100_v2 = vadd.f32 %v1099_v57, %v841_v62 }
 0x1b3   :  { %v2356_v60 = vpack.c.bf16 %v1347_v59, %v1346_v58  ;;  %v1298_v7 = vmax.f32 %v1100_v2, 0.0 }
 0x1b4   :  { %v965_v63 = vpop.f32.mrf.mxu2 }
 0x1b5   :  { %2438 = vst [vmem:[%s3396_s3 + $0x148] sm:$0xff] %v2356_v60   ;;  %v1224_v0 = vpop.f32.mrf.mxu3  ;;  %v966_v5 = vadd.f32 %v3196_v61, %v965_v63 }
 0x1b6   :  { %v842_v1 = vpop.f32.mrf.mxu0 }
 0x1b7   :  { %v843_v3 = vadd.f32 %v3196_v61, %v842_v1  ;;  %v1101_v4 = vpop.f32.mrf.mxu1  ;;  %v1225_v10 = vadd.f32 %v1224_v0, %v966_v5 }
 0x1b9   :  { %v1102_v6 = vadd.f32 %v1101_v4, %v843_v3  ;;  %v1348_v17 = vmax.f32 %v1225_v10, 0.0 }
 0x1bb   :  { %v1299_v8 = vmax.f32 %v1102_v6, 0.0 }
 0x1bc   :  { %v967_v9 = vpop.f32.mrf.mxu2 }
 0x1bd   :  { %v2236_v11 = vpack.c.bf16 %v1299_v8, %v1298_v7  ;;  %v968_v12 = vadd.f32 %v3196_v61, %v967_v9  ;;  %v1226_v13 = vpop.f32.mrf.mxu3 }
 0x1be   :  { %v845_v14 = vpop.f32.mrf.mxu0 }
 0x1bf   :  { %2414 = vst [vmem:[%s3396_s3 + $0x88] sm:$0xff] %v2236_v11   ;;  %v1227_v15 = vadd.f32 %v1226_v13, %v968_v12  ;;  %v1104_v16 = vpop.f32.mrf.mxu1  ;;  %v846_v20 = vadd.f32 %v3196_v61, %v845_v14 }
 0x1c1   :  { %v1349_v18 = vmax.f32 %v1227_v15, 0.0  ;;  %v1105_v24 = vadd.f32 %v1104_v16, %v846_v20 }
 0x1c3   :  { %v2361_v19 = vpack.c.bf16 %v1349_v18, %v1348_v17  ;;  %v1300_v29 = vmax.f32 %v1105_v24, 0.0 }
 0x1c4   :  { %v970_v21 = vpop.f32.mrf.mxu2 }
 0x1c5   :  { %2439 = vst [vmem:[%s3396_s3 + $0x150] sm:$0xff] %v2361_v19   ;;  %v1229_v22 = vpop.f32.mrf.mxu3  ;;  %v971_v27 = vadd.f32 %v3196_v61, %v970_v21 }
 0x1c6   :  { %v847_v23 = vpop.f32.mrf.mxu0 }
 0x1c7   :  { %v848_v25 = vadd.f32 %v3196_v61, %v847_v23  ;;  %v1106_v26 = vpop.f32.mrf.mxu1  ;;  %v1230_v32 = vadd.f32 %v1229_v22, %v971_v27 }
 0x1c9   :  { %v1107_v28 = vadd.f32 %v1106_v26, %v848_v25  ;;  %v1350_v39 = vmax.f32 %v1230_v32, 0.0 }
 0x1cb   :  { %v1301_v30 = vmax.f32 %v1107_v28, 0.0 }
 0x1cc   :  { %v972_v31 = vpop.f32.mrf.mxu2 }
 0x1cd   :  { %v2241_v33 = vpack.c.bf16 %v1301_v30, %v1300_v29  ;;  %v973_v34 = vadd.f32 %v3196_v61, %v972_v31  ;;  %v1231_v35 = vpop.f32.mrf.mxu3 }
 0x1ce   :  { %v850_v36 = vpop.f32.mrf.mxu0 }
 0x1cf   :  { %2415 = vst [vmem:[%s3396_s3 + $0x90] sm:$0xff] %v2241_v33   ;;  %v1232_v37 = vadd.f32 %v1231_v35, %v973_v34  ;;  %v1109_v38 = vpop.f32.mrf.mxu1  ;;  %v851_v42 = vadd.f32 %v3196_v61, %v850_v36 }
 0x1d1   :  { %v1351_v40 = vmax.f32 %v1232_v37, 0.0  ;;  %v1110_v46 = vadd.f32 %v1109_v38, %v851_v42 }
 0x1d3   :  { %v2366_v41 = vpack.c.bf16 %v1351_v40, %v1350_v39  ;;  %v1302_v51 = vmax.f32 %v1110_v46, 0.0 }
 0x1d4   :  { %v975_v43 = vpop.f32.mrf.mxu2 }
 0x1d5   :  { %2440 = vst [vmem:[%s3396_s3 + $0x158] sm:$0xff] %v2366_v41   ;;  %v1234_v44 = vpop.f32.mrf.mxu3  ;;  %v976_v49 = vadd.f32 %v3196_v61, %v975_v43 }
 0x1d6   :  { %v852_v45 = vpop.f32.mrf.mxu0 }
 0x1d7   :  { %v853_v47 = vadd.f32 %v3196_v61, %v852_v45  ;;  %v1111_v48 = vpop.f32.mrf.mxu1  ;;  %v1235_v54 = vadd.f32 %v1234_v44, %v976_v49 }
 0x1d9   :  { %v1112_v50 = vadd.f32 %v1111_v48, %v853_v47  ;;  %v1352_v62 = vmax.f32 %v1235_v54, 0.0 }
 0x1db   :  { %v1303_v52 = vmax.f32 %v1112_v50, 0.0 }
 0x1dc   :  { %v977_v53 = vpop.f32.mrf.mxu2 }
 0x1dd   :  { %v2246_v55 = vpack.c.bf16 %v1303_v52, %v1302_v51  ;;  %v978_v56 = vadd.f32 %v3196_v61, %v977_v53  ;;  %v1236_v57 = vpop.f32.mrf.mxu3 }
 0x1de   :  { %v855_v58 = vpop.f32.mrf.mxu0 }
 0x1df   :  { %2416 = vst [vmem:[%s3396_s3 + $0x98] sm:$0xff] %v2246_v55   ;;  %v1237_v59 = vadd.f32 %v1236_v57, %v978_v56  ;;  %v1114_v60 = vpop.f32.mrf.mxu1  ;;  %v856_v1 = vadd.f32 %v3196_v61, %v855_v58 }
 0x1e1   :  { %v1353_v63 = vmax.f32 %v1237_v59, 0.0  ;;  %v1115_v5 = vadd.f32 %v1114_v60, %v856_v1 }
 0x1e3   :  { %v2371_v0 = vpack.c.bf16 %v1353_v63, %v1352_v62  ;;  %v1304_v10 = vmax.f32 %v1115_v5, 0.0 }
 0x1e4   :  { %v980_v2 = vpop.f32.mrf.mxu2 }
 0x1e5   :  { %2441 = vst [vmem:[%s3396_s3 + $0x160] sm:$0xff] %v2371_v0   ;;  %v1239_v3 = vpop.f32.mrf.mxu3  ;;  %v981_v8 = vadd.f32 %v3196_v61, %v980_v2 }
 0x1e6   :  { %v857_v4 = vpop.f32.mrf.mxu0 }
 0x1e7   :  { %v858_v6 = vadd.f32 %v3196_v61, %v857_v4  ;;  %v1116_v7 = vpop.f32.mrf.mxu1  ;;  %v1240_v13 = vadd.f32 %v1239_v3, %v981_v8 }
 0x1e9   :  { %v1117_v9 = vadd.f32 %v1116_v7, %v858_v6  ;;  %v1354_v20 = vmax.f32 %v1240_v13, 0.0 }
 0x1eb   :  { %v1305_v11 = vmax.f32 %v1117_v9, 0.0 }
 0x1ec   :  { %v982_v12 = vpop.f32.mrf.mxu2 }
 0x1ed   :  { %v2251_v14 = vpack.c.bf16 %v1305_v11, %v1304_v10  ;;  %v983_v15 = vadd.f32 %v3196_v61, %v982_v12  ;;  %v1241_v16 = vpop.f32.mrf.mxu3 }
 0x1ee   :  { %v860_v17 = vpop.f32.mrf.mxu0 }
 0x1ef   :  { %2417 = vst [vmem:[%s3396_s3 + $0xa0] sm:$0xff] %v2251_v14   ;;  %v1242_v18 = vadd.f32 %v1241_v16, %v983_v15  ;;  %v1119_v19 = vpop.f32.mrf.mxu1  ;;  %v861_v23 = vadd.f32 %v3196_v61, %v860_v17 }
 0x1f1   :  { %v1355_v21 = vmax.f32 %v1242_v18, 0.0  ;;  %v1120_v27 = vadd.f32 %v1119_v19, %v861_v23 }
 0x1f3   :  { %v2376_v22 = vpack.c.bf16 %v1355_v21, %v1354_v20  ;;  %v1306_v32 = vmax.f32 %v1120_v27, 0.0 }
 0x1f4   :  { %v985_v24 = vpop.f32.mrf.mxu2 }
 0x1f5   :  { %2442 = vst [vmem:[%s3396_s3 + $0x168] sm:$0xff] %v2376_v22   ;;  %v1244_v25 = vpop.f32.mrf.mxu3  ;;  %v986_v30 = vadd.f32 %v3196_v61, %v985_v24 }
 0x1f6   :  { %v862_v26 = vpop.f32.mrf.mxu0 }
 0x1f7   :  { %v863_v28 = vadd.f32 %v3196_v61, %v862_v26  ;;  %v1121_v29 = vpop.f32.mrf.mxu1  ;;  %v1245_v35 = vadd.f32 %v1244_v25, %v986_v30 }
 0x1f9   :  { %v1122_v31 = vadd.f32 %v1121_v29, %v863_v28  ;;  %v1356_v42 = vmax.f32 %v1245_v35, 0.0 }
 0x1fb   :  { %v1307_v33 = vmax.f32 %v1122_v31, 0.0 }
 0x1fc   :  { %v987_v34 = vpop.f32.mrf.mxu2 }
 0x1fd   :  { %v2256_v36 = vpack.c.bf16 %v1307_v33, %v1306_v32  ;;  %v988_v37 = vadd.f32 %v3196_v61, %v987_v34  ;;  %v1246_v38 = vpop.f32.mrf.mxu3 }
 0x1fe   :  { %v865_v39 = vpop.f32.mrf.mxu0 }
 0x1ff   :  { %2418 = vst [vmem:[%s3396_s3 + $0xa8] sm:$0xff] %v2256_v36   ;;  %v1247_v40 = vadd.f32 %v1246_v38, %v988_v37  ;;  %v1124_v41 = vpop.f32.mrf.mxu1  ;;  %v866_v45 = vadd.f32 %v3196_v61, %v865_v39 }
 0x201   :  { %v1357_v43 = vmax.f32 %v1247_v40, 0.0  ;;  %v1125_v49 = vadd.f32 %v1124_v41, %v866_v45 }
 0x203   :  { %v2381_v44 = vpack.c.bf16 %v1357_v43, %v1356_v42  ;;  %v1308_v54 = vmax.f32 %v1125_v49, 0.0 }
 0x204   :  { %v990_v46 = vpop.f32.mrf.mxu2 }
 0x205   :  { %2443 = vst [vmem:[%s3396_s3 + $0x170] sm:$0xff] %v2381_v44   ;;  %v1249_v47 = vpop.f32.mrf.mxu3  ;;  %v991_v52 = vadd.f32 %v3196_v61, %v990_v46 }
 0x206   :  { %v867_v48 = vpop.f32.mrf.mxu0 }
 0x207   :  { %v868_v50 = vadd.f32 %v3196_v61, %v867_v48  ;;  %v1126_v51 = vpop.f32.mrf.mxu1  ;;  %v1250_v57 = vadd.f32 %v1249_v47, %v991_v52 }
 0x209   :  { %v1127_v53 = vadd.f32 %v1126_v51, %v868_v50  ;;  %v1358_v1 = vmax.f32 %v1250_v57, 0.0 }
 0x20b   :  { %v1309_v55 = vmax.f32 %v1127_v53, 0.0 }
 0x20c   :  { %v992_v56 = vpop.f32.mrf.mxu2 }
 0x20d   :  { %v2261_v58 = vpack.c.bf16 %v1309_v55, %v1308_v54  ;;  %v993_v59 = vadd.f32 %v3196_v61, %v992_v56  ;;  %v1251_v60 = vpop.f32.mrf.mxu3 }
 0x20e   :  { %v870_v62 = vpop.f32.mrf.mxu0 }
 0x20f   :  { %2419 = vst [vmem:[%s3396_s3 + $0xb0] sm:$0xff] %v2261_v58   ;;  %v1252_v63 = vadd.f32 %v1251_v60, %v993_v59  ;;  %v1129_v0 = vpop.f32.mrf.mxu1  ;;  %v871_v4 = vadd.f32 %v3196_v61, %v870_v62 }
 0x211   :  { %v1359_v2 = vmax.f32 %v1252_v63, 0.0  ;;  %v1130_v8 = vadd.f32 %v1129_v0, %v871_v4 }
 0x213   :  { %v2386_v3 = vpack.c.bf16 %v1359_v2, %v1358_v1  ;;  %v1310_v13 = vmax.f32 %v1130_v8, 0.0 }
 0x214   :  { %v995_v5 = vpop.f32.mrf.mxu2 }
 0x215   :  { %2444 = vst [vmem:[%s3396_s3 + $0x178] sm:$0xff] %v2386_v3   ;;  %v1254_v6 = vpop.f32.mrf.mxu3  ;;  %v996_v11 = vadd.f32 %v3196_v61, %v995_v5 }
 0x216   :  { %v872_v7 = vpop.f32.mrf.mxu0 }
 0x217   :  { %v873_v9 = vadd.f32 %v3196_v61, %v872_v7  ;;  %v1131_v10 = vpop.f32.mrf.mxu1  ;;  %v1255_v16 = vadd.f32 %v1254_v6, %v996_v11 }
 0x219   :  { %v1132_v12 = vadd.f32 %v1131_v10, %v873_v9  ;;  %v1360_v23 = vmax.f32 %v1255_v16, 0.0 }
 0x21b   :  { %v1311_v14 = vmax.f32 %v1132_v12, 0.0 }
 0x21c   :  { %v997_v15 = vpop.f32.mrf.mxu2 }
 0x21d   :  { %v2266_v17 = vpack.c.bf16 %v1311_v14, %v1310_v13  ;;  %v998_v18 = vadd.f32 %v3196_v61, %v997_v15  ;;  %v1256_v19 = vpop.f32.mrf.mxu3 }
 0x21e   :  { %v875_v20 = vpop.f32.mrf.mxu0 }
 0x21f   :  { %2420 = vst [vmem:[%s3396_s3 + $0xb8] sm:$0xff] %v2266_v17   ;;  %v1257_v21 = vadd.f32 %v1256_v19, %v998_v18  ;;  %v1134_v22 = vpop.f32.mrf.mxu1  ;;  %v876_v26 = vadd.f32 %v3196_v61, %v875_v20 }
 0x221   :  { %v1361_v24 = vmax.f32 %v1257_v21, 0.0  ;;  %v1135_v30 = vadd.f32 %v1134_v22, %v876_v26 }
 0x223   :  { %v2391_v25 = vpack.c.bf16 %v1361_v24, %v1360_v23  ;;  %v1312_v35 = vmax.f32 %v1135_v30, 0.0 }
 0x224   :  { %v1000_v27 = vpop.f32.mrf.mxu2 }
 0x225   :  { %2445 = vst [vmem:[%s3396_s3 + $0x180] sm:$0xff] %v2391_v25   ;;  %v1259_v28 = vpop.f32.mrf.mxu3  ;;  %v1001_v33 = vadd.f32 %v3196_v61, %v1000_v27 }
 0x226   :  { %v877_v29 = vpop.f32.mrf.mxu0 }
 0x227   :  { %v878_v31 = vadd.f32 %v3196_v61, %v877_v29  ;;  %v1136_v32 = vpop.f32.mrf.mxu1  ;;  %v1260_v38 = vadd.f32 %v1259_v28, %v1001_v33 }
 0x229   :  { %v1137_v34 = vadd.f32 %v1136_v32, %v878_v31  ;;  %v1362_v43 = vmax.f32 %v1260_v38, 0.0 }
 0x22b   :  { %v1313_v36 = vmax.f32 %v1137_v34, 0.0 }
 0x22c   :  { %v1002_v37 = vpop.f32.mrf.mxu2 }
 0x22d   :  { %v2271_v39 = vpack.c.bf16 %v1313_v36, %v1312_v35  ;;  %v1003_v40 = vadd.f32 %v3196_v61, %v1002_v37  ;;  %v1261_v41 = vpop.f32.mrf.mxu3 }
 0x22f   :  { %2421 = vst [vmem:[%s3396_s3 + $0xc0] sm:$0xff] %v2271_v39   ;;  %v1262_v42 = vadd.f32 %v1261_v41, %v1003_v40 }
 0x231   :  { %v1363_v44 = vmax.f32 %v1262_v42, 0.0 }
 0x233   :  { %v2396_v45 = vpack.c.bf16 %v1363_v44, %v1362_v43 }
 0x235   :  { %2446 = vst [vmem:[%s3396_s3 + $0x188] sm:$0xff] %v2396_v45  }

// kernel: a_call__.4
= control target key start
LH: loop header
LB: loop body
LE: loop exit
PB: predicated region body
PF: predicated region fallthrough
CT: control target
= control target key end

     0   :  { %s1750_s1 = inlined_call_operand.vmem [shape: bf16[512,128], index: 1, kind: input, shape index: {}]   ;;  %s1751_s2 = inlined_call_operand.vmem [shape: f32[1,128], index: 2, kind: input, shape index: {}]   ;;  %s1752_s0 = inlined_call_operand.vmem [shape: bf16[176,512], index: 0, kind: input, shape index: {}]   ;;  %s1753_s3 = inlined_call_operand.vmem [shape: bf16[176,128], index: 3, kind: output, shape index: {}]  }
   0x1   :  { %v1219_v0 = vld [vmem:[%s1750_s1 + $0x38] sm:$0xff]  ;;  %v1218_v4 = vld [vmem:[%s1750_s1 + $0x30] sm:$0xff]  ;;  %v1217_v8 = vld [vmem:[%s1750_s1 + $0x28] sm:$0xff] }
   0x2   :  { %v1227_v1 = vld [vmem:[%s1750_s1 + $0x78] sm:$0xff]  ;;  %538 = vmatpush.bf16.msra.mxu0 %v1219_v0  ;;  %v1226_v5 = vld [vmem:[%s1750_s1 + $0x70] sm:$0xff]  ;;  %v1225_v9 = vld [vmem:[%s1750_s1 + $0x68] sm:$0xff] }
   0x3   :  { %v1235_v2 = vld [vmem:[%s1750_s1 + $0xb8] sm:$0xff]  ;;  %602 = vmatpush.bf16.msra.mxu1 %v1227_v1  ;;  %v1234_v6 = vld [vmem:[%s1750_s1 + $0xb0] sm:$0xff]  ;;  %v1233_v10 = vld [vmem:[%s1750_s1 + $0xa8] sm:$0xff] }
   0x4   :  { %v1243_v3 = vld [vmem:[%s1750_s1 + $0xf8] sm:$0xff]  ;;  %666 = vmatpush.bf16.msra.mxu2 %v1235_v2  ;;  %v1242_v7 = vld [vmem:[%s1750_s1 + $0xf0] sm:$0xff]  ;;  %v1241_v11 = vld [vmem:[%s1750_s1 + $0xe8] sm:$0xff] }
   0x5   :  { %730 = vmatpush.bf16.msra.mxu3 %v1243_v3  ;;  %v1216_v12 = vld [vmem:[%s1750_s1 + $0x20] sm:$0xff]  ;;  %v1215_v16 = vld [vmem:[%s1750_s1 + $0x18] sm:$0xff]  ;;  %v1214_v20 = vld [vmem:[%s1750_s1 + $0x10] sm:$0xff] }
   0x6   :  { %539 = vmatpush.bf16.msra.mxu0 %v1218_v4  ;;  %v1224_v13 = vld [vmem:[%s1750_s1 + $0x60] sm:$0xff]  ;;  %v1223_v17 = vld [vmem:[%s1750_s1 + $0x58] sm:$0xff]  ;;  %v1222_v21 = vld [vmem:[%s1750_s1 + $0x50] sm:$0xff] }
   0x7   :  { %603 = vmatpush.bf16.msra.mxu1 %v1226_v5  ;;  %v1232_v14 = vld [vmem:[%s1750_s1 + $0xa0] sm:$0xff]  ;;  %v1231_v18 = vld [vmem:[%s1750_s1 + $0x98] sm:$0xff]  ;;  %v1230_v22 = vld [vmem:[%s1750_s1 + $0x90] sm:$0xff] }
   0x8   :  { %667 = vmatpush.bf16.msra.mxu2 %v1234_v6  ;;  %v1240_v15 = vld [vmem:[%s1750_s1 + $0xe0] sm:$0xff]  ;;  %v1239_v19 = vld [vmem:[%s1750_s1 + $0xd8] sm:$0xff]  ;;  %v1238_v23 = vld [vmem:[%s1750_s1 + $0xd0] sm:$0xff] }
   0x9   :  { %731 = vmatpush.bf16.msra.mxu3 %v1242_v7  ;;  %v1213_v24 = vld [vmem:[%s1750_s1 + $0x8] sm:$0xff]  ;;  %v1212_v28 = vld [vmem:[%s1750_s1] sm:$0xff]  ;;  %v1170_v33 = vld [vmem:[%s1752_s0 + $0xc] sm:$0xf0] }
   0xa   :  { %540 = vmatpush.bf16.msra.mxu0 %v1217_v8  ;;  %v1221_v25 = vld [vmem:[%s1750_s1 + $0x48] sm:$0xff]  ;;  %v1220_v29 = vld [vmem:[%s1750_s1 + $0x40] sm:$0xff]  ;;  %v868_v35 = vld [vmem:[%s1752_s0 + $0x10] sm:$0xf0] }
   0xb   :  { %604 = vmatpush.bf16.msra.mxu1 %v1225_v9  ;;  %v1229_v26 = vld [vmem:[%s1750_s1 + $0x88] sm:$0xff]  ;;  %v1228_v30 = vld [vmem:[%s1750_s1 + $0x80] sm:$0xff]  ;;  %v1171_v37 = vld [vmem:[%s1752_s0 + $0x14] sm:$0xf0] }
   0xc   :  { %668 = vmatpush.bf16.msra.mxu2 %v1233_v10  ;;  %v1237_v27 = vld [vmem:[%s1750_s1 + $0xc8] sm:$0xff]  ;;  %v1236_v31 = vld [vmem:[%s1750_s1 + $0xc0] sm:$0xff]  ;;  %v876_v39 = vld [vmem:[%s1752_s0 + $0x18] sm:$0xf0] }
   0xd   :  { %732 = vmatpush.bf16.msra.mxu3 %v1241_v11  ;;  %v866_v32 = vld [vmem:[%s1752_s0] sm:$0xf]  ;;  %v1168_v34 = vld [vmem:[%s1752_s0 + $0x4] sm:$0xf]  ;;  %v874_v36 = vld [vmem:[%s1752_s0 + $0x8] sm:$0xf] }
   0xe   :  { %541 = vmatpush.bf16.msra.mxu0 %v1216_v12  ;;  %v1169_v38 = vld [vmem:[%s1752_s0 + $0xc] sm:$0xf]  ;;  %v867_v40 = vor.u32 %v1170_v33, %v866_v32  ;;  %v871_v41 = vor.u32 %v1168_v34, %v868_v35  ;;  %v875_v42 = vor.u32 %v1171_v37, %v874_v36  ;;  %v882_v44 = vld [vmem:[%s1752_s0 + $0x20] sm:$0xf]  ;;  %v1174_v45 = vld [vmem:[%s1752_s0 + $0x2c] sm:$0xf0] }
   0xf   :  { %605 = vmatpush.bf16.msra.mxu1 %v1224_v13  ;;  %v879_v43 = vor.u32 %v1169_v38, %v876_v39  ;;  %v1172_v46 = vld [vmem:[%s1752_s0 + $0x24] sm:$0xf]  ;;  %v884_v47 = vld [vmem:[%s1752_s0 + $0x30] sm:$0xf0]  ;;  %v890_v48 = vld [vmem:[%s1752_s0 + $0x28] sm:$0xf]  ;;  %v883_v52 = vor.u32 %v1174_v45, %v882_v44 }
  0x10   :  { %669 = vmatpush.bf16.msra.mxu2 %v1232_v14  ;;  %v1175_v49 = vld [vmem:[%s1752_s0 + $0x34] sm:$0xf0]  ;;  %v1173_v50 = vld [vmem:[%s1752_s0 + $0x2c] sm:$0xf]  ;;  %v892_v51 = vld [vmem:[%s1752_s0 + $0x38] sm:$0xf0]  ;;  %v887_v53 = vor.u32 %v1172_v46, %v884_v47 }
  0x11   :  { %733 = vmatpush.bf16.msra.mxu3 %v1240_v15  ;;  %v891_v54 = vor.u32 %v1175_v49, %v890_v48  ;;  %v895_v55 = vor.u32 %v1173_v50, %v892_v51  ;;  %v898_v56 = vld [vmem:[%s1752_s0 + $0x40] sm:$0xf]  ;;  %v1178_v57 = vld [vmem:[%s1752_s0 + $0x4c] sm:$0xf0]  ;;  %v1176_v58 = vld [vmem:[%s1752_s0 + $0x44] sm:$0xf] }
  0x12   :  { %542 = vmatpush.bf16.msra.mxu0 %v1215_v16  ;;  %v900_v59 = vld [vmem:[%s1752_s0 + $0x50] sm:$0xf0]  ;;  %v906_v60 = vld [vmem:[%s1752_s0 + $0x48] sm:$0xf]  ;;  %v1179_v61 = vld [vmem:[%s1752_s0 + $0x54] sm:$0xf0]  ;;  %v899_v0 = vor.u32 %v1178_v57, %v898_v56 }
  0x13   :  { %606 = vmatpush.bf16.msra.mxu1 %v1223_v17  ;;  %v1177_v62 = vld [vmem:[%s1752_s0 + $0x4c] sm:$0xf]  ;;  %v908_v63 = vld [vmem:[%s1752_s0 + $0x58] sm:$0xf0]  ;;  %v903_v1 = vor.u32 %v1176_v58, %v900_v59  ;;  %v907_v2 = vor.u32 %v1179_v61, %v906_v60  ;;  %v914_v4 = vld [vmem:[%s1752_s0 + $0x60] sm:$0xf] }
  0x14   :  { %670 = vmatpush.bf16.msra.mxu2 %v1231_v18  ;;  %v911_v3 = vor.u32 %v1177_v62, %v908_v63  ;;  %v1182_v5 = vld [vmem:[%s1752_s0 + $0x6c] sm:$0xf0]  ;;  %v1180_v6 = vld [vmem:[%s1752_s0 + $0x64] sm:$0xf]  ;;  %v916_v7 = vld [vmem:[%s1752_s0 + $0x70] sm:$0xf0] }
  0x15   :  { %734 = vmatpush.bf16.msra.mxu3 %v1239_v19  ;;  %v922_v8 = vld [vmem:[%s1752_s0 + $0x68] sm:$0xf]  ;;  %v1183_v9 = vld [vmem:[%s1752_s0 + $0x74] sm:$0xf0]  ;;  %v1181_v10 = vld [vmem:[%s1752_s0 + $0x6c] sm:$0xf]  ;;  %v915_v12 = vor.u32 %v1182_v5, %v914_v4  ;;  %v919_v13 = vor.u32 %v1180_v6, %v916_v7 }
  0x16   :  { %543 = vmatpush.bf16.msra.mxu0 %v1214_v20  ;;  %v924_v11 = vld [vmem:[%s1752_s0 + $0x78] sm:$0xf0]  ;;  %v923_v14 = vor.u32 %v1183_v9, %v922_v8  ;;  %v930_v16 = vld [vmem:[%s1752_s0 + $0x80] sm:$0xf]  ;;  %v1186_v17 = vld [vmem:[%s1752_s0 + $0x8c] sm:$0xf0] }
  0x17   :  { %607 = vmatpush.bf16.msra.mxu1 %v1222_v21  ;;  %v927_v15 = vor.u32 %v1181_v10, %v924_v11  ;;  %v1184_v18 = vld [vmem:[%s1752_s0 + $0x84] sm:$0xf]  ;;  %v932_v19 = vld [vmem:[%s1752_s0 + $0x90] sm:$0xf0]  ;;  %v938_v20 = vld [vmem:[%s1752_s0 + $0x88] sm:$0xf] }
  0x18   :  { %671 = vmatpush.bf16.msra.mxu2 %v1230_v22  ;;  %v1187_v21 = vld [vmem:[%s1752_s0 + $0x94] sm:$0xf0]  ;;  %v1185_v22 = vld [vmem:[%s1752_s0 + $0x8c] sm:$0xf]  ;;  %v954_v32 = vld [vmem:[%s1752_s0 + $0xa8] sm:$0xf] }
  0x19   :  { %735 = vmatpush.bf16.msra.mxu3 %v1238_v23  ;;  %v940_v23 = vld [vmem:[%s1752_s0 + $0x98] sm:$0xf0]  ;;  %v1191_v33 = vld [vmem:[%s1752_s0 + $0xb4] sm:$0xf0]  ;;  %v1189_v34 = vld [vmem:[%s1752_s0 + $0xac] sm:$0xf] }
  0x1a   :  { %544 = vmatpush.bf16.msra.mxu0 %v1213_v24  ;;  %v931_v24 = vor.u32 %v1186_v17, %v930_v16  ;;  %v956_v35 = vld [vmem:[%s1752_s0 + $0xb8] sm:$0xf0]  ;;  %v955_v38 = vor.u32 %v1191_v33, %v954_v32  ;;  %v970_v44 = vld [vmem:[%s1752_s0 + $0xc8] sm:$0xf]  ;;  %v1195_v45 = vld [vmem:[%s1752_s0 + $0xd4] sm:$0xf0] }
  0x1b   :  { %608 = vmatpush.bf16.msra.mxu1 %v1221_v25  ;;  %v935_v25 = vor.u32 %v1184_v18, %v932_v19  ;;  %v959_v39 = vor.u32 %v1189_v34, %v956_v35  ;;  %v1193_v46 = vld [vmem:[%s1752_s0 + $0xcc] sm:$0xf]  ;;  %v972_v47 = vld [vmem:[%s1752_s0 + $0xd8] sm:$0xf0]  ;;  %v971_v50 = vor.u32 %v1195_v45, %v970_v44  ;;  %v986_v56 = vld [vmem:[%s1752_s0 + $0xe8] sm:$0xf] }
  0x1c   :  { %672 = vmatpush.bf16.msra.mxu2 %v1229_v26  ;;  %v939_v26 = vor.u32 %v1187_v21, %v938_v20  ;;  %v975_v51 = vor.u32 %v1193_v46, %v972_v47  ;;  %v1199_v57 = vld [vmem:[%s1752_s0 + $0xf4] sm:$0xf0]  ;;  %v1197_v58 = vld [vmem:[%s1752_s0 + $0xec] sm:$0xf]  ;;  %v988_v59 = vld [vmem:[%s1752_s0 + $0xf8] sm:$0xf0] }
  0x1d   :  { %736 = vmatpush.bf16.msra.mxu3 %v1237_v27  ;;  %v943_v27 = vor.u32 %v1185_v22, %v940_v23  ;;  %v987_v62 = vor.u32 %v1199_v57, %v986_v56  ;;  %v991_v63 = vor.u32 %v1197_v58, %v988_v59  ;;  %v1002_v4 = vld [vmem:[%s1752_s0 + $0x108] sm:$0xf]  ;;  %v1203_v5 = vld [vmem:[%s1752_s0 + $0x114] sm:$0xf0]  ;;  %v1201_v6 = vld [vmem:[%s1752_s0 + $0x10c] sm:$0xf] }
  0x1e   :  { %545 = vmatpush.bf16.msra.mxu0 %v1212_v28  ;;  %v946_v28 = vld [vmem:[%s1752_s0 + $0xa0] sm:$0xf]  ;;  %v1004_v7 = vld [vmem:[%s1752_s0 + $0x118] sm:$0xf0]  ;;  %v1206_v23 = vld [vmem:[%s1752_s0 + $0x12c] sm:$0xf0] }
  0x1f   :  { %609 = vmatpush.bf16.msra.mxu1 %v1220_v29  ;;  %v1190_v29 = vld [vmem:[%s1752_s0 + $0xac] sm:$0xf0]  ;;  %v1645_v10 = vld [vmem:[%s1751_s2] ss:$0 sm:$0xff]  ;;  %v1208_v56 = vld [vmem:[%s1752_s0 + $0x144] sm:$0xf] }
  0x20   :  { %673 = vmatpush.bf16.msra.mxu2 %v1228_v30  ;;  %v1188_v30 = vld [vmem:[%s1752_s0 + $0xa4] sm:$0xf]  ;;  %v947_v36 = vor.u32 %v1190_v29, %v946_v28  ;;  %v1010_v22 = vld [vmem:[%s1752_s0 + $0x120] sm:$0xf]  ;;  %v1207_v28 = vld [vmem:[%s1752_s0 + $0x134] sm:$0xf0] }
  0x21   :  { %737 = vmatpush.bf16.msra.mxu3 %v1236_v31  ;;  %546 = vmatmul.bf16.vlgmr.msra.gmra.mxu0 %v867_v40  ;;  %v948_v31 = vld [vmem:[%s1752_s0 + $0xb0] sm:$0xf0]  ;;  %v962_v40 = vld [vmem:[%s1752_s0 + $0xc0] sm:$0xf]  ;;  %v1205_v29 = vld [vmem:[%s1752_s0 + $0x12c] sm:$0xf]  ;;  %v1011_v34 = vor.u32 %v1206_v23, %v1010_v22 }
  0x22   :  { %610 = vmatmul.bf16.vlgmr.msra.gmra.mxu1 %v871_v41  ;;  %v951_v37 = vor.u32 %v1188_v30, %v948_v31  ;;  %v1194_v41 = vld [vmem:[%s1752_s0 + $0xcc] sm:$0xf0]  ;;  %v1020_v30 = vld [vmem:[%s1752_s0 + $0x138] sm:$0xf0]  ;;  %v1028_v57 = vld [vmem:[%s1752_s0 + $0x150] sm:$0xf0] }
  0x23   :  { %674 = vmatmul.bf16.vlgmr.msra.gmra.mxu2 %v875_v42  ;;  %v1192_v42 = vld [vmem:[%s1752_s0 + $0xc4] sm:$0xf]  ;;  %v963_v48 = vor.u32 %v1194_v41, %v962_v40  ;;  %v1023_v41 = vor.u32 %v1205_v29, %v1020_v30  ;;  %v1034_v58 = vld [vmem:[%s1752_s0 + $0x148] sm:$0xf]  ;;  %v1211_v59 = vld [vmem:[%s1752_s0 + $0x154] sm:$0xf0] }
  0x24   :  { %738 = vmatmul.bf16.vlgmr.msra.gmra.mxu3 %v879_v43  ;;  %v964_v43 = vld [vmem:[%s1752_s0 + $0xd0] sm:$0xf0] }
  0x25   :  { %v967_v49 = vor.u32 %v1192_v42, %v964_v43 }
  0x31   :  { %551 = vmatmul.bf16.gmra.mxu0 %v883_v52  ;;  %v978_v52 = vld [vmem:[%s1752_s0 + $0xe0] sm:$0xf] }
  0x32   :  { %615 = vmatmul.bf16.gmra.mxu1 %v887_v53  ;;  %v1198_v53 = vld [vmem:[%s1752_s0 + $0xec] sm:$0xf0] }
  0x33   :  { %679 = vmatmul.bf16.gmra.mxu2 %v891_v54  ;;  %v1196_v54 = vld [vmem:[%s1752_s0 + $0xe4] sm:$0xf]  ;;  %v979_v60 = vor.u32 %v1198_v53, %v978_v52  ;;  %v1026_v53 = vld [vmem:[%s1752_s0 + $0x140] sm:$0xf] }
  0x34   :  { %743 = vmatmul.bf16.gmra.mxu3 %v895_v55  ;;  %v980_v55 = vld [vmem:[%s1752_s0 + $0xf0] sm:$0xf0] }
  0x35   :  { %v983_v61 = vor.u32 %v1196_v54, %v980_v55  ;;  %v1210_v54 = vld [vmem:[%s1752_s0 + $0x14c] sm:$0xf0] }
  0x41   :  { %556 = vmatmul.bf16.gmra.mxu0 %v899_v0  ;;  %v994_v0 = vld [vmem:[%s1752_s0 + $0x100] sm:$0xf] }
  0x42   :  { %620 = vmatmul.bf16.gmra.mxu1 %v903_v1  ;;  %v1202_v1 = vld [vmem:[%s1752_s0 + $0x10c] sm:$0xf0] }
  0x43   :  { %684 = vmatmul.bf16.gmra.mxu2 %v907_v2  ;;  %v1200_v2 = vld [vmem:[%s1752_s0 + $0x104] sm:$0xf]  ;;  %v995_v8 = vor.u32 %v1202_v1, %v994_v0  ;;  %v1027_v1 = vor.u32 %v1210_v54, %v1026_v53 }
  0x44   :  { %748 = vmatmul.bf16.gmra.mxu3 %v911_v3  ;;  %v996_v3 = vld [vmem:[%s1752_s0 + $0x110] sm:$0xf0] }
  0x45   :  { %v999_v9 = vor.u32 %v1200_v2, %v996_v3  ;;  %v1031_v2 = vor.u32 %v1208_v56, %v1028_v57 }
  0x51   :  { %561 = vmatmul.bf16.gmra.mxu0 %v915_v12 }
  0x52   :  { %625 = vmatmul.bf16.gmra.mxu1 %v919_v13  ;;  %v1003_v13 = vor.u32 %v1203_v5, %v1002_v4 }
  0x53   :  { %689 = vmatmul.bf16.gmra.mxu2 %v923_v14  ;;  %v1007_v14 = vor.u32 %v1201_v6, %v1004_v7  ;;  %v1035_v7 = vor.u32 %v1211_v59, %v1034_v58 }
  0x54   :  { %753 = vmatmul.bf16.gmra.mxu3 %v927_v15 }
  0x61   :  { %566 = vmatmul.bf16.gmra.mxu0 %v931_v24 }
  0x62   :  { %630 = vmatmul.bf16.gmra.mxu1 %v935_v25  ;;  %v1204_v25 = vld [vmem:[%s1752_s0 + $0x124] sm:$0xf] }
  0x63   :  { %694 = vmatmul.bf16.gmra.mxu2 %v939_v26  ;;  %v1012_v26 = vld [vmem:[%s1752_s0 + $0x130] sm:$0xf0] }
  0x64   :  { %758 = vmatmul.bf16.gmra.mxu3 %v943_v27  ;;  %v1018_v27 = vld [vmem:[%s1752_s0 + $0x128] sm:$0xf]  ;;  %v1015_v35 = vor.u32 %v1204_v25, %v1012_v26 }
  0x65   :  { %v1019_v40 = vor.u32 %v1207_v28, %v1018_v27 }
  0x71   :  { %571 = vmatmul.bf16.gmra.mxu0 %v947_v36 }
  0x72   :  { %635 = vmatmul.bf16.gmra.mxu1 %v951_v37 }
  0x73   :  { %699 = vmatmul.bf16.gmra.mxu2 %v955_v38 }
  0x74   :  { %763 = vmatmul.bf16.gmra.mxu3 %v959_v39 }
  0x81   :  { %576 = vmatmul.bf16.gmra.mxu0 %v963_v48 }
  0x82   :  { %640 = vmatmul.bf16.gmra.mxu1 %v967_v49 }
  0x83   :  { %704 = vmatmul.bf16.gmra.mxu2 %v971_v50 }
  0x84   :  { %768 = vmatmul.bf16.gmra.mxu3 %v975_v51 }
  0x91   :  { %581 = vmatmul.bf16.gmra.mxu0 %v979_v60  ;;  %v1209_v60 = vld [vmem:[%s1752_s0 + $0x14c] sm:$0xf] }
  0x92   :  { %645 = vmatmul.bf16.gmra.mxu1 %v983_v61  ;;  %v1036_v61 = vld [vmem:[%s1752_s0 + $0x158] sm:$0xf0] }
  0x93   :  { %709 = vmatmul.bf16.gmra.mxu2 %v987_v62 }
  0x94   :  { %773 = vmatmul.bf16.gmra.mxu3 %v991_v63 }
  0x9e   :  { %v547_v11 = vpop.f32.mrf.mxu0 }
  0x9f   :  { %v611_v12 = vpop.f32.mrf.mxu1  ;;  %v548_v15 = vadd.f32 %v1645_v10, %v547_v11 }
  0xa1   :  { %586 = vmatmul.bf16.gmra.mxu0 %v995_v8  ;;  %v612_v18 = vadd.f32 %v611_v12, %v548_v15  ;;  %v1039_v8 = vor.u32 %v1209_v60, %v1036_v61 }
  0xa2   :  { %650 = vmatmul.bf16.gmra.mxu1 %v999_v9 }
  0xa3   :  { %714 = vmatmul.bf16.gmra.mxu2 %v1003_v13 }
  0xa4   :  { %778 = vmatmul.bf16.gmra.mxu3 %v1007_v14 }
  0xa6   :  { %v675_v16 = vpop.f32.mrf.mxu2  ;;  %v549_v19 = vpop.f32.mrf.mxu0 }
  0xa7   :  { %v739_v17 = vpop.f32.mrf.mxu3  ;;  %v613_v20 = vpop.f32.mrf.mxu1  ;;  %v550_v21 = vadd.f32 %v1645_v10, %v549_v19  ;;  %v676_v24 = vadd.f32 %v675_v16, %v612_v18 }
  0xa9   :  { %v614_v31 = vadd.f32 %v613_v20, %v550_v21  ;;  %v740_v36 = vadd.f32 %v739_v17, %v676_v24 }
  0xab   :  { %v794_v43 = vmax.f32 %v740_v36, 0.0 }
  0xae   :  { %v677_v32 = vpop.f32.mrf.mxu2  ;;  %v552_v38 = vpop.f32.mrf.mxu0 }
  0xaf   :  { %v741_v33 = vpop.f32.mrf.mxu3  ;;  %v678_v37 = vadd.f32 %v677_v32, %v614_v31  ;;  %v616_v39 = vpop.f32.mrf.mxu1  ;;  %v553_v45 = vadd.f32 %v1645_v10, %v552_v38 }
  0xb1   :  { %v742_v42 = vadd.f32 %v741_v33, %v678_v37  ;;  %591 = vmatmul.bf16.gmra.mxu0 %v1011_v34  ;;  %v617_v49 = vadd.f32 %v616_v39, %v553_v45 }
  0xb2   :  { %655 = vmatmul.bf16.gmra.mxu1 %v1015_v35 }
  0xb3   :  { %v795_v44 = vmax.f32 %v742_v42, 0.0  ;;  %719 = vmatmul.bf16.gmra.mxu2 %v1019_v40 }
  0xb4   :  { %783 = vmatmul.bf16.gmra.mxu3 %v1023_v41 }
  0xb5   :  { %v1247_v46 = vpack.c.bf16 %v795_v44, %v794_v43 }
  0xb6   :  { %v680_v47 = vpop.f32.mrf.mxu2  ;;  %v554_v50 = vpop.f32.mrf.mxu0 }
  0xb7   :  { %v744_v48 = vpop.f32.mrf.mxu3  ;;  %1248 = vst [vmem:[%s1753_s3] sm:$0xff] %v1247_v46   ;;  %v618_v51 = vpop.f32.mrf.mxu1  ;;  %v555_v52 = vadd.f32 %v1645_v10, %v554_v50  ;;  %v681_v55 = vadd.f32 %v680_v47, %v617_v49 }
  0xb9   :  { %v619_v62 = vadd.f32 %v618_v51, %v555_v52  ;;  %v745_v3 = vadd.f32 %v744_v48, %v681_v55 }
  0xbb   :  { %v796_v11 = vmax.f32 %v745_v3, 0.0 }
  0xbe   :  { %v682_v63 = vpop.f32.mrf.mxu2  ;;  %v557_v5 = vpop.f32.mrf.mxu0 }
  0xbf   :  { %v746_v0 = vpop.f32.mrf.mxu3  ;;  %v683_v4 = vadd.f32 %v682_v63, %v619_v62  ;;  %v621_v6 = vpop.f32.mrf.mxu1  ;;  %v558_v13 = vadd.f32 %v1645_v10, %v557_v5 }
  0xc1   :  { %v747_v9 = vadd.f32 %v746_v0, %v683_v4  ;;  %596 = vmatmul.bf16.gmra.mxu0 %v1027_v1  ;;  %v622_v17 = vadd.f32 %v621_v6, %v558_v13 }
  0xc2   :  { %660 = vmatmul.bf16.gmra.mxu1 %v1031_v2 }
  0xc3   :  { %v797_v12 = vmax.f32 %v747_v9, 0.0  ;;  %724 = vmatmul.bf16.gmra.mxu2 %v1035_v7 }
  0xc4   :  { %788 = vmatmul.bf16.gmra.mxu3 %v1039_v8 }
  0xc5   :  { %v1252_v14 = vpack.c.bf16 %v797_v12, %v796_v11 }
  0xc6   :  { %v685_v15 = vpop.f32.mrf.mxu2  ;;  %v559_v18 = vpop.f32.mrf.mxu0 }
  0xc7   :  { %v749_v16 = vpop.f32.mrf.mxu3  ;;  %1299 = vst [vmem:[%s1753_s3 + $0x8] sm:$0xff] %v1252_v14   ;;  %v623_v19 = vpop.f32.mrf.mxu1  ;;  %v560_v20 = vadd.f32 %v1645_v10, %v559_v18  ;;  %v686_v21 = vadd.f32 %v685_v15, %v622_v17 }
  0xc9   :  { %v624_v22 = vadd.f32 %v623_v19, %v560_v20  ;;  %v750_v25 = vadd.f32 %v749_v16, %v686_v21 }
  0xcb   :  { %v798_v30 = vmax.f32 %v750_v25, 0.0 }
  0xce   :  { %v687_v23 = vpop.f32.mrf.mxu2  ;;  %v562_v27 = vpop.f32.mrf.mxu0 }
  0xcf   :  { %v751_v24 = vpop.f32.mrf.mxu3  ;;  %v688_v26 = vadd.f32 %v687_v23, %v624_v22  ;;  %v626_v28 = vpop.f32.mrf.mxu1  ;;  %v563_v32 = vadd.f32 %v1645_v10, %v562_v27 }
  0xd1   :  { %v752_v29 = vadd.f32 %v751_v24, %v688_v26  ;;  %v627_v36 = vadd.f32 %v626_v28, %v563_v32 }
  0xd3   :  { %v799_v31 = vmax.f32 %v752_v29, 0.0 }
  0xd5   :  { %v1257_v33 = vpack.c.bf16 %v799_v31, %v798_v30 }
  0xd6   :  { %v690_v34 = vpop.f32.mrf.mxu2  ;;  %v564_v37 = vpop.f32.mrf.mxu0 }
  0xd7   :  { %v754_v35 = vpop.f32.mrf.mxu3  ;;  %1300 = vst [vmem:[%s1753_s3 + $0x10] sm:$0xff] %v1257_v33   ;;  %v628_v38 = vpop.f32.mrf.mxu1  ;;  %v565_v39 = vadd.f32 %v1645_v10, %v564_v37  ;;  %v691_v40 = vadd.f32 %v690_v34, %v627_v36 }
  0xd9   :  { %v629_v41 = vadd.f32 %v628_v38, %v565_v39  ;;  %v755_v44 = vadd.f32 %v754_v35, %v691_v40 }
  0xdb   :  { %v800_v49 = vmax.f32 %v755_v44, 0.0 }
  0xde   :  { %v692_v42 = vpop.f32.mrf.mxu2  ;;  %v567_v46 = vpop.f32.mrf.mxu0 }
  0xdf   :  { %v756_v43 = vpop.f32.mrf.mxu3  ;;  %v693_v45 = vadd.f32 %v692_v42, %v629_v41  ;;  %v631_v47 = vpop.f32.mrf.mxu1  ;;  %v568_v51 = vadd.f32 %v1645_v10, %v567_v46 }
  0xe1   :  { %v757_v48 = vadd.f32 %v756_v43, %v693_v45  ;;  %v632_v55 = vadd.f32 %v631_v47, %v568_v51 }
  0xe3   :  { %v801_v50 = vmax.f32 %v757_v48, 0.0 }
  0xe5   :  { %v1262_v52 = vpack.c.bf16 %v801_v50, %v800_v49 }
  0xe6   :  { %v695_v53 = vpop.f32.mrf.mxu2  ;;  %v569_v56 = vpop.f32.mrf.mxu0 }
  0xe7   :  { %v759_v54 = vpop.f32.mrf.mxu3  ;;  %1301 = vst [vmem:[%s1753_s3 + $0x18] sm:$0xff] %v1262_v52   ;;  %v633_v57 = vpop.f32.mrf.mxu1  ;;  %v570_v58 = vadd.f32 %v1645_v10, %v569_v56  ;;  %v696_v59 = vadd.f32 %v695_v53, %v632_v55 }
  0xe9   :  { %v634_v60 = vadd.f32 %v633_v57, %v570_v58  ;;  %v760_v63 = vadd.f32 %v759_v54, %v696_v59 }
  0xeb   :  { %v802_v4 = vmax.f32 %v760_v63, 0.0 }
  0xee   :  { %v697_v61 = vpop.f32.mrf.mxu2  ;;  %v572_v1 = vpop.f32.mrf.mxu0 }
  0xef   :  { %v761_v62 = vpop.f32.mrf.mxu3  ;;  %v698_v0 = vadd.f32 %v697_v61, %v634_v60  ;;  %v636_v2 = vpop.f32.mrf.mxu1  ;;  %v573_v6 = vadd.f32 %v1645_v10, %v572_v1 }
  0xf1   :  { %v762_v3 = vadd.f32 %v761_v62, %v698_v0  ;;  %v637_v11 = vadd.f32 %v636_v2, %v573_v6 }
  0xf3   :  { %v803_v5 = vmax.f32 %v762_v3, 0.0 }
  0xf5   :  { %v1267_v7 = vpack.c.bf16 %v803_v5, %v802_v4 }
  0xf6   :  { %v700_v8 = vpop.f32.mrf.mxu2  ;;  %v574_v12 = vpop.f32.mrf.mxu0 }
  0xf7   :  { %v764_v9 = vpop.f32.mrf.mxu3  ;;  %1302 = vst [vmem:[%s1753_s3 + $0x20] sm:$0xff] %v1267_v7   ;;  %v638_v13 = vpop.f32.mrf.mxu1  ;;  %v575_v14 = vadd.f32 %v1645_v10, %v574_v12  ;;  %v701_v15 = vadd.f32 %v700_v8, %v637_v11 }
  0xf9   :  { %v639_v16 = vadd.f32 %v638_v13, %v575_v14  ;;  %v765_v19 = vadd.f32 %v764_v9, %v701_v15 }
  0xfb   :  { %v804_v24 = vmax.f32 %v765_v19, 0.0 }
  0xfe   :  { %v702_v17 = vpop.f32.mrf.mxu2  ;;  %v577_v21 = vpop.f32.mrf.mxu0 }
  0xff   :  { %v766_v18 = vpop.f32.mrf.mxu3  ;;  %v703_v20 = vadd.f32 %v702_v17, %v639_v16  ;;  %v641_v22 = vpop.f32.mrf.mxu1  ;;  %v578_v26 = vadd.f32 %v1645_v10, %v577_v21 }
 0x101   :  { %v767_v23 = vadd.f32 %v766_v18, %v703_v20  ;;  %v642_v30 = vadd.f32 %v641_v22, %v578_v26 }
 0x103   :  { %v805_v25 = vmax.f32 %v767_v23, 0.0 }
 0x105   :  { %v1272_v27 = vpack.c.bf16 %v805_v25, %v804_v24 }
 0x106   :  { %v705_v28 = vpop.f32.mrf.mxu2  ;;  %v579_v31 = vpop.f32.mrf.mxu0 }
 0x107   :  { %v769_v29 = vpop.f32.mrf.mxu3  ;;  %1303 = vst [vmem:[%s1753_s3 + $0x28] sm:$0xff] %v1272_v27   ;;  %v643_v32 = vpop.f32.mrf.mxu1  ;;  %v580_v33 = vadd.f32 %v1645_v10, %v579_v31  ;;  %v706_v34 = vadd.f32 %v705_v28, %v642_v30 }
 0x109   :  { %v644_v35 = vadd.f32 %v643_v32, %v580_v33  ;;  %v770_v38 = vadd.f32 %v769_v29, %v706_v34 }
 0x10b   :  { %v806_v43 = vmax.f32 %v770_v38, 0.0 }
 0x10e   :  { %v707_v36 = vpop.f32.mrf.mxu2  ;;  %v582_v40 = vpop.f32.mrf.mxu0 }
 0x10f   :  { %v771_v37 = vpop.f32.mrf.mxu3  ;;  %v708_v39 = vadd.f32 %v707_v36, %v644_v35  ;;  %v646_v41 = vpop.f32.mrf.mxu1  ;;  %v583_v45 = vadd.f32 %v1645_v10, %v582_v40 }
 0x111   :  { %v772_v42 = vadd.f32 %v771_v37, %v708_v39  ;;  %v647_v49 = vadd.f32 %v646_v41, %v583_v45 }
 0x113   :  { %v807_v44 = vmax.f32 %v772_v42, 0.0 }
 0x115   :  { %v1277_v46 = vpack.c.bf16 %v807_v44, %v806_v43 }
 0x116   :  { %v710_v47 = vpop.f32.mrf.mxu2  ;;  %v584_v50 = vpop.f32.mrf.mxu0 }
 0x117   :  { %v774_v48 = vpop.f32.mrf.mxu3  ;;  %1304 = vst [vmem:[%s1753_s3 + $0x30] sm:$0xff] %v1277_v46   ;;  %v648_v51 = vpop.f32.mrf.mxu1  ;;  %v585_v52 = vadd.f32 %v1645_v10, %v584_v50  ;;  %v711_v53 = vadd.f32 %v710_v47, %v647_v49 }
 0x119   :  { %v649_v54 = vadd.f32 %v648_v51, %v585_v52  ;;  %v775_v57 = vadd.f32 %v774_v48, %v711_v53 }
 0x11b   :  { %v808_v62 = vmax.f32 %v775_v57, 0.0 }
 0x11e   :  { %v712_v55 = vpop.f32.mrf.mxu2  ;;  %v587_v59 = vpop.f32.mrf.mxu0 }
 0x11f   :  { %v776_v56 = vpop.f32.mrf.mxu3  ;;  %v713_v58 = vadd.f32 %v712_v55, %v649_v54  ;;  %v651_v60 = vpop.f32.mrf.mxu1  ;;  %v588_v0 = vadd.f32 %v1645_v10, %v587_v59 }
 0x121   :  { %v777_v61 = vadd.f32 %v776_v56, %v713_v58  ;;  %v652_v4 = vadd.f32 %v651_v60, %v588_v0 }
 0x123   :  { %v809_v63 = vmax.f32 %v777_v61, 0.0 }
 0x125   :  { %v1282_v1 = vpack.c.bf16 %v809_v63, %v808_v62 }
 0x126   :  { %v715_v2 = vpop.f32.mrf.mxu2  ;;  %v589_v5 = vpop.f32.mrf.mxu0 }
 0x127   :  { %v779_v3 = vpop.f32.mrf.mxu3  ;;  %1305 = vst [vmem:[%s1753_s3 + $0x38] sm:$0xff] %v1282_v1   ;;  %v653_v6 = vpop.f32.mrf.mxu1  ;;  %v590_v7 = vadd.f32 %v1645_v10, %v589_v5  ;;  %v716_v8 = vadd.f32 %v715_v2, %v652_v4 }
 0x129   :  { %v654_v9 = vadd.f32 %v653_v6, %v590_v7  ;;  %v780_v13 = vadd.f32 %v779_v3, %v716_v8 }
 0x12b   :  { %v810_v18 = vmax.f32 %v780_v13, 0.0 }
 0x12e   :  { %v717_v11 = vpop.f32.mrf.mxu2  ;;  %v592_v15 = vpop.f32.mrf.mxu0 }
 0x12f   :  { %v781_v12 = vpop.f32.mrf.mxu3  ;;  %v718_v14 = vadd.f32 %v717_v11, %v654_v9  ;;  %v656_v16 = vpop.f32.mrf.mxu1  ;;  %v593_v20 = vadd.f32 %v1645_v10, %v592_v15 }
 0x131   :  { %v782_v17 = vadd.f32 %v781_v12, %v718_v14  ;;  %v657_v24 = vadd.f32 %v656_v16, %v593_v20 }
 0x133   :  { %v811_v19 = vmax.f32 %v782_v17, 0.0 }
 0x135   :  { %v1287_v21 = vpack.c.bf16 %v811_v19, %v810_v18 }
 0x136   :  { %v720_v22 = vpop.f32.mrf.mxu2  ;;  %v594_v25 = vpop.f32.mrf.mxu0 }
 0x137   :  { %v784_v23 = vpop.f32.mrf.mxu3  ;;  %1306 = vst [vmem:[%s1753_s3 + $0x40] sm:$0xff] %v1287_v21   ;;  %v658_v26 = vpop.f32.mrf.mxu1  ;;  %v595_v27 = vadd.f32 %v1645_v10, %v594_v25  ;;  %v721_v28 = vadd.f32 %v720_v22, %v657_v24 }
 0x139   :  { %v659_v29 = vadd.f32 %v658_v26, %v595_v27  ;;  %v785_v32 = vadd.f32 %v784_v23, %v721_v28 }
 0x13b   :  { %v812_v37 = vmax.f32 %v785_v32, 0.0 }
 0x13e   :  { %v722_v30 = vpop.f32.mrf.mxu2  ;;  %v597_v34 = vpop.f32.mrf.mxu0 }
 0x13f   :  { %v786_v31 = vpop.f32.mrf.mxu3  ;;  %v723_v33 = vadd.f32 %v722_v30, %v659_v29  ;;  %v661_v36 = vpop.f32.mrf.mxu1  ;;  %v598_v39 = vadd.f32 %v1645_v10, %v597_v34 }
 0x141   :  { %v787_v35 = vadd.f32 %v786_v31, %v723_v33  ;;  %v662_v43 = vadd.f32 %v661_v36, %v598_v39 }
 0x143   :  { %v813_v38 = vmax.f32 %v787_v35, 0.0 }
 0x145   :  { %v1292_v40 = vpack.c.bf16 %v813_v38, %v812_v37 }
 0x146   :  { %v725_v41 = vpop.f32.mrf.mxu2  ;;  %v599_v44 = vpop.f32.mrf.mxu0 }
 0x147   :  { %v789_v42 = vpop.f32.mrf.mxu3  ;;  %1307 = vst [vmem:[%s1753_s3 + $0x48] sm:$0xff] %v1292_v40   ;;  %v600_v45 = vadd.f32 %v1645_v10, %v599_v44  ;;  %v726_v46 = vadd.f32 %v725_v41, %v662_v43  ;;  %v663_v47 = vpop.f32.mrf.mxu1 }
 0x149   :  { %v664_v48 = vadd.f32 %v663_v47, %v600_v45  ;;  %v790_v50 = vadd.f32 %v789_v42, %v726_v46 }
 0x14b   :  { %v814_v54 = vmax.f32 %v790_v50, 0.0 }
 0x14e   :  { %v727_v49 = vpop.f32.mrf.mxu2 }
 0x14f   :  { %v728_v51 = vadd.f32 %v727_v49, %v664_v48  ;;  %v791_v52 = vpop.f32.mrf.mxu3 }
 0x151   :  { %v792_v53 = vadd.f32 %v791_v52, %v728_v51 }
 0x153   :  { %v815_v55 = vmax.f32 %v792_v53, 0.0 }
 0x155   :  { %v1297_v56 = vpack.c.bf16 %v815_v55, %v814_v54 }
 0x157   :  { %1308 = vst [vmem:[%s1753_s3 + $0x50] sm:$0xff] %v1297_v56  }

// kernel: a_call__.5
= control target key start
LH: loop header
LB: loop body
LE: loop exit
PB: predicated region body
PF: predicated region fallthrough
CT: control target
= control target key end

     0   :  { %vm524_vm0 = vcmask 523264   ;;  %s1621_s1 = inlined_call_operand.vmem [shape: bf16[576,128], index: 1, kind: input, shape index: {}]   ;;  %s1622_s2 = inlined_call_operand.vmem [shape: f32[1,128], index: 2, kind: input, shape index: {}]   ;;  %s1623_s0 = inlined_call_operand.vmem [shape: bf16[112,576], index: 0, kind: input, shape index: {}]   ;;  %s1624_s3 = inlined_call_operand.vmem [shape: f32[112,128], index: 3, kind: output, shape index: {}]  }
   0x1   :  { %v1131_v0 = vld [vmem:[%s1621_s1 + $0x38] sm:$0xff]  ;;  %v1130_v1 = vld [vmem:[%s1621_s1 + $0x30] sm:$0xff]  ;;  %v1129_v2 = vld [vmem:[%s1621_s1 + $0x28] sm:$0xff] }
   0x2   :  { %1160 = vmatpush.bf16.msra.mxu1 %v1131_v0  ;;  %1161 = vmatpush.bf16.msra.mxu2 %v1131_v0  ;;  %v1128_v3 = vld [vmem:[%s1621_s1 + $0x20] sm:$0xff]  ;;  %v1127_v4 = vld [vmem:[%s1621_s1 + $0x18] sm:$0xff]  ;;  %v1126_v5 = vld [vmem:[%s1621_s1 + $0x10] sm:$0xff] }
   0x3   :  { %1162 = vmatpush.bf16.msra.mxu3 %v1131_v0  ;;  %546 = vmatpush.bf16.msra.mxu0 %v1131_v0  ;;  %v1125_v6 = vld [vmem:[%s1621_s1 + $0x8] sm:$0xff]  ;;  %v1124_v7 = vld [vmem:[%s1621_s1] sm:$0xff]  ;;  %v840_v8 = vld [vmem:[%s1623_s0 + $0x50] sm:$0xf] }
   0x4   :  { %v1101_v9 = vld [vmem:[%s1623_s0 + $0x60] sm:$0xf0]  ;;  %v880_v10 = vld [vmem:[%s1623_s0 + $0xa0] sm:$0xf]  ;;  %v1111_v11 = vld [vmem:[%s1623_s0 + $0xb0] sm:$0xf0] }
   0x5   :  { %v1155_v12 = vld [vmem:[%s1621_s1 + $0xf8] sm:$0xff]  ;;  %v800_v13 = vld [vmem:[%s1623_s0] sm:$0xf]  ;;  %v1091_v14 = vld [vmem:[%s1623_s0 + $0x10] sm:$0xf0]  ;;  %v841_v18 = vor.u32 %v1101_v9, %v840_v8  ;;  %v881_v19 = vor.u32 %v1111_v11, %v880_v10 }
   0x6   :  { %1163 = vmatpush.bf16.msra.mxu1 %v1130_v1  ;;  %1164 = vmatpush.bf16.msra.mxu2 %v1130_v1  ;;  %v1147_v15 = vld [vmem:[%s1621_s1 + $0xb8] sm:$0xff]  ;;  %v920_v16 = vld [vmem:[%s1623_s0 + $0xf0] sm:$0xf]  ;;  %v1121_v17 = vld [vmem:[%s1623_s0 + $0x100] sm:$0xf0]  ;;  %v801_v21 = vor.u32 %v1091_v14, %v800_v13 }
   0x7   :  { %1165 = vmatpush.bf16.msra.mxu3 %v1130_v1  ;;  %547 = vmatpush.bf16.msra.mxu0 %v1130_v1  ;;  %v1139_v20 = vld [vmem:[%s1621_s1 + $0x78] sm:$0xff]  ;;  %v921_v22 = vor.u32 %v1121_v17, %v920_v16  ;;  %v1154_v24 = vld [vmem:[%s1621_s1 + $0xf0] sm:$0xff]  ;;  %v1153_v28 = vld [vmem:[%s1621_s1 + $0xe8] sm:$0xff] }
   0x8   :  { %v1159_v23 = vld [vmem:[%s1621_s1 + $0x118] sm:$0xff]  ;;  %v1146_v25 = vld [vmem:[%s1621_s1 + $0xb0] sm:$0xff]  ;;  %v1145_v29 = vld [vmem:[%s1621_s1 + $0xa8] sm:$0xff] }
   0x9   :  { %v1138_v26 = vld [vmem:[%s1621_s1 + $0x70] sm:$0xff]  ;;  %v1137_v30 = vld [vmem:[%s1621_s1 + $0x68] sm:$0xff]  ;;  %v1152_v32 = vld [vmem:[%s1621_s1 + $0xe0] sm:$0xff] }
   0xa   :  { %1166 = vmatpush.bf16.msra.mxu1 %v1129_v2  ;;  %1167 = vmatpush.bf16.msra.mxu2 %v1129_v2  ;;  %v1158_v27 = vld [vmem:[%s1621_s1 + $0x110] sm:$0xff]  ;;  %v1157_v31 = vld [vmem:[%s1621_s1 + $0x108] sm:$0xff]  ;;  %v1144_v33 = vld [vmem:[%s1621_s1 + $0xa0] sm:$0xff] }
   0xb   :  { %1168 = vmatpush.bf16.msra.mxu3 %v1129_v2  ;;  %548 = vmatpush.bf16.msra.mxu0 %v1129_v2  ;;  %v1136_v34 = vld [vmem:[%s1621_s1 + $0x60] sm:$0xff]  ;;  %v860_v35 = vld [vmem:[%s1623_s0 + $0x78] sm:$0xf]  ;;  %v1106_v36 = vld [vmem:[%s1623_s0 + $0x88] sm:$0xf0] }
   0xc   :  { %v900_v37 = vld [vmem:[%s1623_s0 + $0xc8] sm:$0xf]  ;;  %v1116_v38 = vld [vmem:[%s1623_s0 + $0xd8] sm:$0xf0]  ;;  %v1156_v41 = vld [vmem:[%s1621_s1 + $0x100] sm:$0xff]  ;;  %v861_v44 = vor.u32 %v1106_v36, %v860_v35 }
   0xd   :  { %v820_v39 = vld [vmem:[%s1623_s0 + $0x28] sm:$0xf]  ;;  %v1096_v40 = vld [vmem:[%s1623_s0 + $0x38] sm:$0xf0]  ;;  %v901_v45 = vor.u32 %v1116_v38, %v900_v37  ;;  %v1150_v48 = vld [vmem:[%s1621_s1 + $0xd0] sm:$0xff] }
   0xe   :  { %1169 = vmatpush.bf16.msra.mxu1 %v1128_v3  ;;  %1170 = vmatpush.bf16.msra.mxu2 %v1128_v3  ;;  %v1151_v42 = vld [vmem:[%s1621_s1 + $0xd8] sm:$0xff]  ;;  %v821_v47 = vor.u32 %v1096_v40, %v820_v39  ;;  %v1142_v49 = vld [vmem:[%s1621_s1 + $0x90] sm:$0xff]  ;;  %v1149_v51 = vld [vmem:[%s1621_s1 + $0xc8] sm:$0xff] }
   0xf   :  { %1171 = vmatpush.bf16.msra.mxu3 %v1128_v3  ;;  %549 = vmatpush.bf16.msra.mxu0 %v1128_v3  ;;  %v1143_v43 = vld [vmem:[%s1621_s1 + $0x98] sm:$0xff]  ;;  %v1134_v50 = vld [vmem:[%s1621_s1 + $0x50] sm:$0xff]  ;;  %v1141_v52 = vld [vmem:[%s1621_s1 + $0x88] sm:$0xff] }
  0x10   :  { %v1135_v46 = vld [vmem:[%s1621_s1 + $0x58] sm:$0xff]  ;;  %v1133_v53 = vld [vmem:[%s1621_s1 + $0x48] sm:$0xff]  ;;  %v1148_v54 = vld [vmem:[%s1621_s1 + $0xc0] sm:$0xff] }
  0x11   :  { %v1140_v55 = vld [vmem:[%s1621_s1 + $0x80] sm:$0xff]  ;;  %v1090_v56 = vld [vmem:[%s1623_s0 + $0xc] sm:$0xf]  ;;  %v802_v60 = vld [vmem:[%s1623_s0 + $0x14] sm:$0xf0] }
  0x12   :  { %1172 = vmatpush.bf16.msra.mxu1 %v1127_v4  ;;  %1173 = vmatpush.bf16.msra.mxu2 %v1127_v4  ;;  %v810_v57 = vld [vmem:[%s1623_s0 + $0x1c] sm:$0xf0]  ;;  %v1089_v59 = vld [vmem:[%s1623_s0 + $0x4] sm:$0xf]  ;;  %v808_v61 = vld [vmem:[%s1623_s0 + $0x8] sm:$0xf] }
  0x13   :  { %1174 = vmatpush.bf16.msra.mxu3 %v1127_v4  ;;  %550 = vmatpush.bf16.msra.mxu0 %v1127_v4  ;;  %v1132_v58 = vld [vmem:[%s1621_s1 + $0x40] sm:$0xff]  ;;  %v1092_v62 = vld [vmem:[%s1623_s0 + $0x18] sm:$0xf0]  ;;  %v813_v63 = vor.u32 %v1090_v56, %v810_v57  ;;  %v816_v0 = vld [vmem:[%s1623_s0 + $0x10] sm:$0xf]  ;;  %v805_v2 = vor.u32 %v1089_v59, %v802_v60 }
  0x14   :  { %v1093_v1 = vld [vmem:[%s1623_s0 + $0x20] sm:$0xf0]  ;;  %v809_v3 = vor.u32 %v1092_v62, %v808_v61  ;;  %v822_v8 = vld [vmem:[%s1623_s0 + $0x3c] sm:$0xf0]  ;;  %v828_v9 = vld [vmem:[%s1623_s0 + $0x30] sm:$0xf] }
  0x15   :  { %v817_v4 = vor.u32 %v1093_v1, %v816_v0  ;;  %v1097_v10 = vld [vmem:[%s1623_s0 + $0x40] sm:$0xf0]  ;;  %v1098_v13 = vld [vmem:[%s1623_s0 + $0x48] sm:$0xf0]  ;;  %v1100_v17 = vld [vmem:[%s1623_s0 + $0x5c] sm:$0xf] }
  0x16   :  { %1175 = vmatpush.bf16.msra.mxu1 %v1126_v5  ;;  %1176 = vmatpush.bf16.msra.mxu2 %v1126_v5  ;;  %v876_v36 = vld [vmem:[%s1623_s0 + $0x88] sm:$0xf]  ;;  %v1108_v37 = vld [vmem:[%s1623_s0 + $0x98] sm:$0xf0]  ;;  %v902_v56 = vld [vmem:[%s1623_s0 + $0xdc] sm:$0xf0] }
  0x17   :  { %1177 = vmatpush.bf16.msra.mxu3 %v1126_v5  ;;  %551 = vmatpush.bf16.msra.mxu0 %v1126_v5  ;;  %v1095_v5 = vld [vmem:[%s1623_s0 + $0x34] sm:$0xf]  ;;  %v877_v40 = vor.u32 %v1108_v37, %v876_v36  ;;  %v908_v57 = vld [vmem:[%s1623_s0 + $0xd0] sm:$0xf]  ;;  %v916_v60 = vld [vmem:[%s1623_s0 + $0xd8] sm:$0xf] }
  0x18   :  { %v1118_v61 = vld [vmem:[%s1623_s0 + $0xe8] sm:$0xf0]  ;;  %v1120_v1 = vld [vmem:[%s1623_s0 + $0xfc] sm:$0xf] }
  0x19   :  { %v917_v0 = vor.u32 %v1118_v61, %v916_v60 }
  0x1a   :  { %1178 = vmatpush.bf16.msra.mxu1 %v1125_v6  ;;  %1179 = vmatpush.bf16.msra.mxu2 %v1125_v6 }
  0x1b   :  { %1180 = vmatpush.bf16.msra.mxu3 %v1125_v6  ;;  %552 = vmatpush.bf16.msra.mxu0 %v1125_v6  ;;  %v830_v6 = vld [vmem:[%s1623_s0 + $0x44] sm:$0xf0] }
  0x1c   :  { %v833_v11 = vor.u32 %v1095_v5, %v830_v6  ;;  %v928_v5 = vld [vmem:[%s1623_s0 + $0xf8] sm:$0xf]  ;;  %v1122_v6 = vld [vmem:[%s1623_s0 + $0x108] sm:$0xf0] }
  0x1e   :  { %1181 = vmatpush.bf16.msra.mxu1 %v1124_v7  ;;  %1182 = vmatpush.bf16.msra.mxu2 %v1124_v7 }
  0x1f   :  { %1183 = vmatpush.bf16.msra.mxu3 %v1124_v7  ;;  %553 = vmatpush.bf16.msra.mxu0 %v1124_v7  ;;  %v1094_v7 = vld [vmem:[%s1623_s0 + $0x2c] sm:$0xf] }
  0x20   :  { %v825_v14 = vor.u32 %v1094_v7, %v822_v8  ;;  %v936_v8 = vld [vmem:[%s1623_s0 + $0x100] sm:$0xf] }
  0x21   :  { %564 = vmatmul.bf16.vlgmr.msra.gmra.mxu1 %v841_v18  ;;  %574 = vmatmul.bf16.vlgmr.msra.gmra.mxu2 %v881_v19  ;;  %v850_v18 = vld [vmem:[%s1623_s0 + $0x6c] sm:$0xf0]  ;;  %v1099_v19 = vld [vmem:[%s1623_s0 + $0x54] sm:$0xf] }
  0x22   :  { %634 = vmatpush.bf16.msrb.mxu2 %v1147_v15  ;;  %590 = vmatpush.bf16.msrb.mxu1 %v1139_v20  ;;  %v829_v15 = vor.u32 %v1097_v10, %v828_v9  ;;  %v842_v20 = vld [vmem:[%s1623_s0 + $0x64] sm:$0xf0]  ;;  %v1123_v9 = vld [vmem:[%s1623_s0 + $0x110] sm:$0xf0] }
  0x23   :  { %678 = vmatpush.bf16.msrb.mxu3 %v1155_v12  ;;  %554 = vmatmul.bf16.vlgmr.msra.gmra.mxu0 %v801_v21  ;;  %v836_v12 = vld [vmem:[%s1623_s0 + $0x38] sm:$0xf] }
  0x24   :  { %584 = vmatmul.bf16.vlgmr.msra.gmra.mxu3 %v921_v22  ;;  %726 = vmatpush.bf16.msrb.mxu0 %v1159_v23  ;;  %v837_v16 = vor.u32 %v1098_v13, %v836_v12  ;;  %v848_v21 = vld [vmem:[%s1623_s0 + $0x58] sm:$0xf]  ;;  %v1102_v22 = vld [vmem:[%s1623_s0 + $0x68] sm:$0xf0]  ;;  %v853_v23 = vor.u32 %v1100_v17, %v850_v18  ;;  %v937_v13 = vor.u32 %v1123_v9, %v936_v8 }
  0x26   :  { %635 = vmatpush.bf16.msrb.mxu2 %v1146_v25  ;;  %591 = vmatpush.bf16.msrb.mxu1 %v1138_v26  ;;  %v1103_v25 = vld [vmem:[%s1623_s0 + $0x70] sm:$0xf0]  ;;  %v845_v26 = vor.u32 %v1099_v19, %v842_v20 }
  0x27   :  { %679 = vmatpush.bf16.msrb.mxu3 %v1154_v24  ;;  %v856_v24 = vld [vmem:[%s1623_s0 + $0x60] sm:$0xf] }
  0x28   :  { %727 = vmatpush.bf16.msrb.mxu0 %v1158_v27  ;;  %v849_v27 = vor.u32 %v1102_v22, %v848_v21 }
  0x2a   :  { %636 = vmatpush.bf16.msrb.mxu2 %v1145_v29  ;;  %592 = vmatpush.bf16.msrb.mxu1 %v1137_v30  ;;  %v1105_v29 = vld [vmem:[%s1623_s0 + $0x84] sm:$0xf]  ;;  %v870_v30 = vld [vmem:[%s1623_s0 + $0x94] sm:$0xf0] }
  0x2b   :  { %680 = vmatpush.bf16.msrb.mxu3 %v1153_v28  ;;  %v857_v28 = vor.u32 %v1103_v25, %v856_v24  ;;  %v873_v35 = vor.u32 %v1105_v29, %v870_v30 }
  0x2c   :  { %728 = vmatpush.bf16.msrb.mxu0 %v1157_v31  ;;  %v1104_v31 = vld [vmem:[%s1623_s0 + $0x7c] sm:$0xf] }
  0x2e   :  { %637 = vmatpush.bf16.msrb.mxu2 %v1144_v33  ;;  %593 = vmatpush.bf16.msrb.mxu1 %v1136_v34  ;;  %v868_v33 = vld [vmem:[%s1623_s0 + $0x80] sm:$0xf]  ;;  %v1107_v34 = vld [vmem:[%s1623_s0 + $0x90] sm:$0xf0] }
  0x2f   :  { %681 = vmatpush.bf16.msrb.mxu3 %v1152_v32  ;;  %v862_v32 = vld [vmem:[%s1623_s0 + $0x8c] sm:$0xf0]  ;;  %v869_v39 = vor.u32 %v1107_v34, %v868_v33 }
  0x30   :  { %729 = vmatpush.bf16.msrb.mxu0 %v1156_v41  ;;  %v865_v38 = vor.u32 %v1104_v31, %v862_v32  ;;  %v1110_v41 = vld [vmem:[%s1623_s0 + $0xac] sm:$0xf] }
  0x31   :  { %569 = vmatmul.bf16.gmra.mxu1 %v861_v44  ;;  %579 = vmatmul.bf16.gmra.mxu2 %v901_v45  ;;  %v882_v44 = vld [vmem:[%s1623_s0 + $0xb4] sm:$0xf0]  ;;  %v888_v45 = vld [vmem:[%s1623_s0 + $0xa8] sm:$0xf] }
  0x32   :  { %638 = vmatpush.bf16.msrb.mxu2 %v1143_v43  ;;  %594 = vmatpush.bf16.msrb.mxu1 %v1135_v46  ;;  %v1109_v43 = vld [vmem:[%s1623_s0 + $0xa4] sm:$0xf]  ;;  %v1112_v46 = vld [vmem:[%s1623_s0 + $0xb8] sm:$0xf0] }
  0x33   :  { %682 = vmatpush.bf16.msrb.mxu3 %v1151_v42  ;;  %559 = vmatmul.bf16.gmra.mxu0 %v821_v47  ;;  %v890_v42 = vld [vmem:[%s1623_s0 + $0xbc] sm:$0xf0] }
  0x34   :  { %v893_v47 = vor.u32 %v1110_v41, %v890_v42 }
  0x36   :  { %639 = vmatpush.bf16.msrb.mxu2 %v1142_v49  ;;  %595 = vmatpush.bf16.msrb.mxu1 %v1134_v50  ;;  %v1113_v49 = vld [vmem:[%s1623_s0 + $0xc0] sm:$0xf0]  ;;  %v885_v50 = vor.u32 %v1109_v43, %v882_v44 }
  0x37   :  { %683 = vmatpush.bf16.msrb.mxu3 %v1150_v48  ;;  %v896_v48 = vld [vmem:[%s1623_s0 + $0xb0] sm:$0xf] }
  0x3a   :  { %640 = vmatpush.bf16.msrb.mxu2 %v1141_v52  ;;  %596 = vmatpush.bf16.msrb.mxu1 %v1133_v53  ;;  %v897_v52 = vor.u32 %v1113_v49, %v896_v48  ;;  %v1115_v53 = vld [vmem:[%s1623_s0 + $0xd4] sm:$0xf] }
  0x3b   :  { %684 = vmatpush.bf16.msrb.mxu3 %v1149_v51  ;;  %v889_v51 = vor.u32 %v1112_v46, %v888_v45 }
  0x3e   :  { %641 = vmatpush.bf16.msrb.mxu2 %v1140_v55  ;;  %597 = vmatpush.bf16.msrb.mxu1 %v1132_v58  ;;  %v1114_v55 = vld [vmem:[%s1623_s0 + $0xcc] sm:$0xf]  ;;  %v1117_v58 = vld [vmem:[%s1623_s0 + $0xe0] sm:$0xf0] }
  0x3f   :  { %685 = vmatpush.bf16.msrb.mxu3 %v1148_v54  ;;  %v910_v54 = vld [vmem:[%s1623_s0 + $0xe4] sm:$0xf0]  ;;  %v905_v62 = vor.u32 %v1114_v55, %v902_v56 }
  0x40   :  { %v913_v59 = vor.u32 %v1115_v53, %v910_v54 }
  0x41   :  { %598 = vmatmul.bf16.vlgmr.msrb.gmra.mxu1 %v805_v2  ;;  %642 = vmatmul.bf16.vlgmr.msrb.gmra.mxu2 %v809_v3  ;;  %v930_v2 = vld [vmem:[%s1623_s0 + $0x10c] sm:$0xf0]  ;;  %v1119_v3 = vld [vmem:[%s1623_s0 + $0xf4] sm:$0xf] }
  0x42   :  { %686 = vmatmul.bf16.vlgmr.msrb.gmra.mxu3 %v813_v63  ;;  %v909_v63 = vor.u32 %v1117_v58, %v908_v57  ;;  %v933_v7 = vor.u32 %v1120_v1, %v930_v2 }
  0x43   :  { %1082 = vmatmul.msk.bf16.vlgmr.msrb.gmra.mxu0 %vm524_vm0, %v817_v4  ;;  %v922_v4 = vld [vmem:[%s1623_s0 + $0x104] sm:$0xf0] }
  0x44   :  { %v925_v10 = vor.u32 %v1119_v3, %v922_v4 }
  0x51   :  { %603 = vmatmul.bf16.gmra.mxu1 %v825_v14  ;;  %647 = vmatmul.bf16.gmra.mxu2 %v829_v15  ;;  %v1535_v15 = vld [vmem:[%s1622_s2] ss:$0 sm:$0xff] }
  0x52   :  { %691 = vmatmul.bf16.gmra.mxu3 %v833_v11  ;;  %v929_v11 = vor.u32 %v1122_v6, %v928_v5 }
  0x53   :  { %1083 = vmatmul.msk.bf16.gmra.mxu0 %vm524_vm0, %v837_v16 }
  0x61   :  { %608 = vmatmul.bf16.gmra.mxu1 %v845_v26  ;;  %652 = vmatmul.bf16.gmra.mxu2 %v849_v27 }
  0x62   :  { %696 = vmatmul.bf16.gmra.mxu3 %v853_v23 }
  0x63   :  { %1084 = vmatmul.msk.bf16.gmra.mxu0 %vm524_vm0, %v857_v28 }
  0x71   :  { %613 = vmatmul.bf16.gmra.mxu1 %v865_v38  ;;  %657 = vmatmul.bf16.gmra.mxu2 %v869_v39 }
  0x72   :  { %701 = vmatmul.bf16.gmra.mxu3 %v873_v35 }
  0x73   :  { %1085 = vmatmul.msk.bf16.gmra.mxu0 %vm524_vm0, %v877_v40 }
  0x81   :  { %618 = vmatmul.bf16.gmra.mxu1 %v885_v50  ;;  %662 = vmatmul.bf16.gmra.mxu2 %v889_v51 }
  0x82   :  { %706 = vmatmul.bf16.gmra.mxu3 %v893_v47 }
  0x83   :  { %1086 = vmatmul.msk.bf16.gmra.mxu0 %vm524_vm0, %v897_v52 }
  0x91   :  { %623 = vmatmul.bf16.gmra.mxu1 %v905_v62  ;;  %667 = vmatmul.bf16.gmra.mxu2 %v909_v63 }
  0x92   :  { %711 = vmatmul.bf16.gmra.mxu3 %v913_v59 }
  0x93   :  { %1087 = vmatmul.msk.bf16.gmra.mxu0 %vm524_vm0, %v917_v0 }
  0x9e   :  { %v1529_v12 = vpop.f32.mrf.mxu1 }
  0xa0   :  { %v555_v14 = vpop.f32.mrf.mxu0 }
  0xa1   :  { %628 = vmatmul.bf16.gmra.mxu1 %v925_v10  ;;  %672 = vmatmul.bf16.gmra.mxu2 %v929_v11  ;;  %v556_v36 = vadd.f32 %v1535_v15, %v555_v14  ;;  %v566_v10 = vadd.f32 %v1535_v15, %v1529_v12 }
  0xa2   :  { %716 = vmatmul.bf16.gmra.mxu3 %v933_v7 }
  0xa3   :  { %1088 = vmatmul.msk.bf16.gmra.mxu0 %vm524_vm0, %v937_v13 }
  0xa4   :  { %v575_v16 = vpop.f32.mrf.mxu2 }
  0xa5   :  { %v1538_v17 = vadd.f32 %v1535_v15, %v575_v16 }
  0xa6   :  { %v1540_v18 = vpop.f32.mrf.mxu1 }
  0xa7   :  { %v585_v19 = vpop.f32.mrf.mxu3 }
  0xa8   :  { %v557_v20 = vpop.f32.mrf.mxu0  ;;  %v1543_v21 = vadd.f32 %v1535_v15, %v585_v19 }
  0xa9   :  { %v558_v44 = vadd.f32 %v1535_v15, %v557_v20 }
  0xac   :  { %v577_v22 = vpop.f32.mrf.mxu2 }
  0xad   :  { %v1546_v23 = vadd.f32 %v1535_v15, %v577_v22 }
  0xae   :  { %v1548_v24 = vpop.f32.mrf.mxu1 }
  0xaf   :  { %v587_v25 = vpop.f32.mrf.mxu3 }
  0xb0   :  { %v560_v26 = vpop.f32.mrf.mxu0  ;;  %v1551_v27 = vadd.f32 %v1535_v15, %v587_v25 }
  0xb1   :  { %v561_v54 = vadd.f32 %v1535_v15, %v560_v26 }
  0xb4   :  { %v580_v28 = vpop.f32.mrf.mxu2 }
  0xb5   :  { %v1554_v29 = vadd.f32 %v1535_v15, %v580_v28  ;;  %v568_v28 = vadd.f32 %v1535_v15, %v1540_v18 }
  0xb6   :  { %v1556_v30 = vpop.f32.mrf.mxu1 }
  0xb8   :  { %v562_v31 = vpop.f32.mrf.mxu0 }
  0xb9   :  { %v563_v0 = vadd.f32 %v1535_v15, %v562_v31 }
  0xbc   :  { %v582_v32 = vpop.f32.mrf.mxu2 }
  0xbd   :  { %v1559_v33 = vadd.f32 %v1535_v15, %v582_v32 }
  0xbe   :  { %v599_v34 = vpop.f32.mrf.mxu1 }
  0xbf   :  { %v600_v38 = vadd.f32 %v599_v34, %v556_v36 }
  0xc0   :  { %v731_v35 = vpop.f32.mrf.mxu0 }
  0xc4   :  { %v643_v39 = vpop.f32.mrf.mxu2 }
  0xc5   :  { %v687_v37 = vpop.f32.mrf.mxu3  ;;  %v644_v40 = vadd.f32 %v643_v39, %v600_v38 }
  0xc6   :  { %v601_v41 = vpop.f32.mrf.mxu1 }
  0xc7   :  { %v688_v42 = vadd.f32 %v687_v37, %v644_v40  ;;  %v602_v48 = vadd.f32 %v601_v41, %v558_v44  ;;  %v571_v40 = vadd.f32 %v1535_v15, %v1548_v24 }
  0xc8   :  { %v733_v43 = vpop.f32.mrf.mxu0 }
  0xc9   :  { %v732_v45 = vadd.f32 %v731_v35, %v688_v42 }
  0xcb   :  { %v766_v47 = vmax.f32 %v732_v45, 0.0 }
  0xcc   :  { %v645_v49 = vpop.f32.mrf.mxu2 }
  0xcd   :  { %v689_v46 = vpop.f32.mrf.mxu3  ;;  %780 = vst [vmem:[%s1624_s3] sm:$0xff] %v766_v47  ;;  %v646_v50 = vadd.f32 %v645_v49, %v602_v48  ;;  %v573_v49 = vadd.f32 %v1535_v15, %v1556_v30 }
  0xce   :  { %v604_v51 = vpop.f32.mrf.mxu1 }
  0xcf   :  { %v690_v52 = vadd.f32 %v689_v46, %v646_v50  ;;  %v605_v58 = vadd.f32 %v604_v51, %v561_v54 }
  0xd0   :  { %v736_v53 = vpop.f32.mrf.mxu0 }
  0xd1   :  { %v734_v55 = vadd.f32 %v733_v43, %v690_v52 }
  0xd3   :  { %v767_v57 = vmax.f32 %v734_v55, 0.0 }
  0xd4   :  { %v648_v59 = vpop.f32.mrf.mxu2 }
  0xd5   :  { %v692_v56 = vpop.f32.mrf.mxu3  ;;  %781 = vst [vmem:[%s1624_s3 + $0x8] sm:$0xff] %v767_v57  ;;  %v649_v60 = vadd.f32 %v648_v59, %v605_v58 }
  0xd6   :  { %v606_v61 = vpop.f32.mrf.mxu1 }
  0xd7   :  { %v693_v62 = vadd.f32 %v692_v56, %v649_v60  ;;  %v607_v4 = vadd.f32 %v606_v61, %v563_v0 }
  0xd8   :  { %v738_v63 = vpop.f32.mrf.mxu0 }
  0xd9   :  { %v737_v1 = vadd.f32 %v736_v53, %v693_v62 }
  0xdb   :  { %v768_v3 = vmax.f32 %v737_v1, 0.0 }
  0xdc   :  { %v650_v5 = vpop.f32.mrf.mxu2 }
  0xdd   :  { %v694_v2 = vpop.f32.mrf.mxu3  ;;  %782 = vst [vmem:[%s1624_s3 + $0x10] sm:$0xff] %v768_v3  ;;  %v651_v6 = vadd.f32 %v650_v5, %v607_v4 }
  0xde   :  { %v609_v7 = vpop.f32.mrf.mxu1 }
  0xdf   :  { %v695_v8 = vadd.f32 %v694_v2, %v651_v6  ;;  %v610_v16 = vadd.f32 %v609_v7, %v566_v10 }
  0xe0   :  { %v741_v9 = vpop.f32.mrf.mxu0 }
  0xe1   :  { %v739_v11 = vadd.f32 %v738_v63, %v695_v8 }
  0xe3   :  { %v769_v14 = vmax.f32 %v739_v11, 0.0 }
  0xe4   :  { %v653_v19 = vpop.f32.mrf.mxu2 }
  0xe5   :  { %v697_v13 = vpop.f32.mrf.mxu3  ;;  %783 = vst [vmem:[%s1624_s3 + $0x18] sm:$0xff] %v769_v14  ;;  %v654_v20 = vadd.f32 %v653_v19, %v610_v16 }
  0xe6   :  { %v611_v22 = vpop.f32.mrf.mxu1 }
  0xe7   :  { %v698_v25 = vadd.f32 %v697_v13, %v654_v20  ;;  %v612_v12 = vadd.f32 %v611_v22, %v568_v28 }
  0xe8   :  { %v743_v26 = vpop.f32.mrf.mxu0 }
  0xe9   :  { %v742_v31 = vadd.f32 %v741_v9, %v698_v25 }
  0xeb   :  { %v770_v34 = vmax.f32 %v742_v31, 0.0 }
  0xec   :  { %v655_v35 = vpop.f32.mrf.mxu2 }
  0xed   :  { %v699_v32 = vpop.f32.mrf.mxu3  ;;  %784 = vst [vmem:[%s1624_s3 + $0x20] sm:$0xff] %v770_v34  ;;  %v656_v36 = vadd.f32 %v655_v35, %v612_v12 }
  0xee   :  { %v614_v37 = vpop.f32.mrf.mxu1 }
  0xef   :  { %v700_v38 = vadd.f32 %v699_v32, %v656_v36  ;;  %v615_v18 = vadd.f32 %v614_v37, %v571_v40 }
  0xf0   :  { %v746_v39 = vpop.f32.mrf.mxu0 }
  0xf1   :  { %v744_v41 = vadd.f32 %v743_v26, %v700_v38 }
  0xf3   :  { %v771_v43 = vmax.f32 %v744_v41, 0.0 }
  0xf4   :  { %v658_v44 = vpop.f32.mrf.mxu2 }
  0xf5   :  { %v702_v42 = vpop.f32.mrf.mxu3  ;;  %785 = vst [vmem:[%s1624_s3 + $0x28] sm:$0xff] %v771_v43  ;;  %v659_v45 = vadd.f32 %v658_v44, %v615_v18 }
  0xf6   :  { %v616_v46 = vpop.f32.mrf.mxu1 }
  0xf7   :  { %v703_v47 = vadd.f32 %v702_v42, %v659_v45  ;;  %v617_v24 = vadd.f32 %v616_v46, %v573_v49 }
  0xf8   :  { %v748_v48 = vpop.f32.mrf.mxu0 }
  0xf9   :  { %v747_v50 = vadd.f32 %v746_v39, %v703_v47 }
  0xfb   :  { %v772_v52 = vmax.f32 %v747_v50, 0.0 }
  0xfc   :  { %v660_v53 = vpop.f32.mrf.mxu2 }
  0xfd   :  { %v704_v51 = vpop.f32.mrf.mxu3  ;;  %786 = vst [vmem:[%s1624_s3 + $0x30] sm:$0xff] %v772_v52  ;;  %v661_v54 = vadd.f32 %v660_v53, %v617_v24 }
  0xfe   :  { %v619_v55 = vpop.f32.mrf.mxu1 }
  0xff   :  { %v705_v56 = vadd.f32 %v704_v51, %v661_v54  ;;  %v620_v61 = vadd.f32 %v619_v55, %v1538_v17 }
 0x100   :  { %v751_v57 = vpop.f32.mrf.mxu0 }
 0x101   :  { %v749_v58 = vadd.f32 %v748_v48, %v705_v56 }
 0x103   :  { %v773_v60 = vmax.f32 %v749_v58, 0.0 }
 0x104   :  { %v663_v62 = vpop.f32.mrf.mxu2 }
 0x105   :  { %v707_v59 = vpop.f32.mrf.mxu3  ;;  %787 = vst [vmem:[%s1624_s3 + $0x38] sm:$0xff] %v773_v60  ;;  %v664_v15 = vadd.f32 %v663_v62, %v620_v61 }
 0x106   :  { %v621_v30 = vpop.f32.mrf.mxu1 }
 0x107   :  { %v708_v63 = vadd.f32 %v707_v59, %v664_v15  ;;  %v622_v4 = vadd.f32 %v621_v30, %v1546_v23 }
 0x108   :  { %v753_v0 = vpop.f32.mrf.mxu0 }
 0x109   :  { %v752_v1 = vadd.f32 %v751_v57, %v708_v63 }
 0x10b   :  { %v774_v3 = vmax.f32 %v752_v1, 0.0 }
 0x10c   :  { %v665_v5 = vpop.f32.mrf.mxu2 }
 0x10d   :  { %v709_v2 = vpop.f32.mrf.mxu3  ;;  %788 = vst [vmem:[%s1624_s3 + $0x40] sm:$0xff] %v774_v3  ;;  %v666_v17 = vadd.f32 %v665_v5, %v622_v4 }
 0x10e   :  { %v624_v6 = vpop.f32.mrf.mxu1 }
 0x10f   :  { %v710_v7 = vadd.f32 %v709_v2, %v666_v17  ;;  %v625_v13 = vadd.f32 %v624_v6, %v1554_v29 }
 0x110   :  { %v756_v9 = vpop.f32.mrf.mxu0 }
 0x111   :  { %v754_v8 = vadd.f32 %v753_v0, %v710_v7 }
 0x113   :  { %v775_v11 = vmax.f32 %v754_v8, 0.0 }
 0x114   :  { %v668_v14 = vpop.f32.mrf.mxu2 }
 0x115   :  { %v712_v10 = vpop.f32.mrf.mxu3  ;;  %789 = vst [vmem:[%s1624_s3 + $0x48] sm:$0xff] %v775_v11  ;;  %v669_v23 = vadd.f32 %v668_v14, %v625_v13 }
 0x116   :  { %v626_v16 = vpop.f32.mrf.mxu1 }
 0x117   :  { %v713_v19 = vadd.f32 %v712_v10, %v669_v23  ;;  %v627_v26 = vadd.f32 %v626_v16, %v1559_v33 }
 0x118   :  { %v758_v28 = vpop.f32.mrf.mxu0 }
 0x119   :  { %v757_v20 = vadd.f32 %v756_v9, %v713_v19 }
 0x11b   :  { %v776_v25 = vmax.f32 %v757_v20, 0.0 }
 0x11c   :  { %v670_v31 = vpop.f32.mrf.mxu2 }
 0x11d   :  { %v714_v22 = vpop.f32.mrf.mxu3  ;;  %790 = vst [vmem:[%s1624_s3 + $0x50] sm:$0xff] %v776_v25  ;;  %v671_v29 = vadd.f32 %v670_v31, %v627_v26 }
 0x11e   :  { %v629_v32 = vpop.f32.mrf.mxu1 }
 0x11f   :  { %v715_v34 = vadd.f32 %v714_v22, %v671_v29  ;;  %v630_v36 = vadd.f32 %v629_v32, %v1543_v21 }
 0x120   :  { %v761_v39 = vpop.f32.mrf.mxu0 }
 0x121   :  { %v759_v12 = vadd.f32 %v758_v28, %v715_v34 }
 0x123   :  { %v777_v35 = vmax.f32 %v759_v12, 0.0 }
 0x124   :  { %v673_v38 = vpop.f32.mrf.mxu2 }
 0x125   :  { %v717_v37 = vpop.f32.mrf.mxu3  ;;  %791 = vst [vmem:[%s1624_s3 + $0x58] sm:$0xff] %v777_v35  ;;  %v674_v33 = vadd.f32 %v673_v38, %v630_v36 }
 0x126   :  { %v631_v41 = vpop.f32.mrf.mxu1 }
 0x127   :  { %v718_v40 = vadd.f32 %v717_v37, %v674_v33  ;;  %v632_v18 = vadd.f32 %v631_v41, %v1551_v27 }
 0x128   :  { %v763_v47 = vpop.f32.mrf.mxu0 }
 0x129   :  { %v762_v42 = vadd.f32 %v761_v39, %v718_v40 }
 0x12b   :  { %v778_v43 = vmax.f32 %v762_v42, 0.0 }
 0x12c   :  { %v675_v44 = vpop.f32.mrf.mxu2 }
 0x12d   :  { %792 = vst [vmem:[%s1624_s3 + $0x60] sm:$0xff] %v778_v43  ;;  %v676_v21 = vadd.f32 %v675_v44, %v632_v18  ;;  %v719_v45 = vpop.f32.mrf.mxu3 }
 0x12f   :  { %v720_v46 = vadd.f32 %v719_v45, %v676_v21 }
 0x131   :  { %v764_v48 = vadd.f32 %v763_v47, %v720_v46 }
 0x133   :  { %v779_v49 = vmax.f32 %v764_v48, 0.0 }
 0x135   :  { %793 = vst [vmem:[%s1624_s3 + $0x68] sm:$0xff] %v779_v49 }

</bundles_post_ra>
